<compile_context>
chip_gen: v5e
topology: v5e:2x2
jax: 0.10.0
libtpu: 0.0.40
codegen_flags: <defaults>
</compile_context>

<pallas_src>
import math

import jax
import jax.numpy as jnp
import numpy as np
from jax.experimental import pallas as pl
from jax.experimental.pallas import tpu as pltpu

# ----------------------------- configuration -------------------------------
INPUT_DIM = 7          # e.g. target position (3) + quaternion (4)
OUTPUT_DIM = 6         # Cobotta: 6 joints
NUM_HEADS = 4
NUM_LAYERS = 2
HIDDEN_DIM = 32
FF_DIM = HIDDEN_DIM * 4
SEQ_LEN = 8
BATCH = 2
HEAD_DIM = HIDDEN_DIM // NUM_HEADS
TOKENS = BATCH * SEQ_LEN     # batch folded into the token (sublane) axis
HEAD_HIDDEN = 64             # output-head hidden width
OUT_PAD = 128                # lane-dense padded output width
LN_EPS = 1e-5                # PyTorch LayerNorm default
NEG_BIG = -1e9               # additive mask for cross-sample attention


# -------------------- packed parameter slab layout (static) -----------------
def _round8(n):
    return -(-n // 8) * 8


def _build_layout():
    lay = [('w_emb', INPUT_DIM, HIDDEN_DIM),
           ('b_emb', 1, HIDDEN_DIM),
           ('mask', TOKENS, TOKENS)]
    for l in range(NUM_LAYERS):
        lay += [(f'wqkv{l}', HIDDEN_DIM, 3 * HIDDEN_DIM),
                (f'bqkv{l}', 1, 3 * HIDDEN_DIM),
                (f'wo{l}', HIDDEN_DIM, HIDDEN_DIM),
                (f'bo{l}', 1, HIDDEN_DIM),
                (f'ln1g{l}', 1, HIDDEN_DIM),
                (f'ln1b{l}', 1, HIDDEN_DIM),
                (f'w1{l}', HIDDEN_DIM, FF_DIM),
                (f'b1{l}', 1, FF_DIM),
                (f'w2{l}', FF_DIM, HIDDEN_DIM),
                (f'b2{l}', 1, HIDDEN_DIM),
                (f'ln2g{l}', 1, HIDDEN_DIM),
                (f'ln2b{l}', 1, HIDDEN_DIM)]
    lay += [('wh', HIDDEN_DIM, HEAD_HIDDEN),
            ('bh', 1, HEAD_HIDDEN),
            ('wout', HEAD_HIDDEN, OUT_PAD),
            ('bout', 1, OUT_PAD),
            ('scale', 1, OUT_PAD),
            ('shift', 1, OUT_PAD)]
    return lay


_LAYOUT = _build_layout()
SHAPES = {name: (rows, cols) for name, rows, cols in _LAYOUT}
OFF = {}
_cur = 0
for _name, _rows, _cols in _LAYOUT:
    OFF[_name] = _cur
    _cur += _round8(_rows)          # 8-sublane aligned start per array
SLAB_ROWS = _cur                    # multiple of 8 by construction


# ------------------------------ kernel body ---------------------------------
def _layernorm(x, g, b):
    mu = jnp.mean(x, axis=-1, keepdims=True)
    var = jnp.mean((x - mu) ** 2, axis=-1, keepdims=True)
    return (x - mu) * jax.lax.rsqrt(var + LN_EPS) * g + b


def _softmax(x):
    m = jnp.max(x, axis=-1, keepdims=True)
    e = jnp.exp(x - m)
    # reciprocal on the EUP slot (free next to the VPU work); tolerance is 1e-2.
    return e * pl.reciprocal(jnp.sum(e, axis=-1, keepdims=True), approx=True)


def ik_transformer_kernel(x_ref, p_ref, o_ref):
    def P(name):
        rows, cols = SHAPES[name]
        off = OFF[name]
        return p_ref[off:off + rows, 0:cols]     # static sub-view load

    x = x_ref[...]                               # (TOKENS, INPUT_DIM)
    mask = P('mask')                             # (TOKENS, TOKENS) host-built

    # embedding over all folded tokens at once
    h = jnp.dot(x, P('w_emb'),
                preferred_element_type=jnp.float32) + P('b_emb')   # (T, H)

    dn = (((1,), (1,)), ((), ()))    # contract last dims of both operands
    for l in range(NUM_LAYERS):
        # fused QKV projection: one (T,H)@(H,3H) matmul.  1/sqrt(HEAD_DIM) is
        # already folded into the Q weight/bias on the host.
        qkv = jnp.dot(h, P(f'wqkv{l}'),
                      preferred_element_type=jnp.float32) + P(f'bqkv{l}')
        heads = []
        for hh in range(NUM_HEADS):
            q = qkv[:, hh * HEAD_DIM:(hh + 1) * HEAD_DIM]
            k = qkv[:, HIDDEN_DIM + hh * HEAD_DIM:
                    HIDDEN_DIM + (hh + 1) * HEAD_DIM]
            v = qkv[:, 2 * HIDDEN_DIM + hh * HEAD_DIM:
                    2 * HIDDEN_DIM + (hh + 1) * HEAD_DIM]
            scores = jax.lax.dot_general(q, k, dn,
                                         preferred_element_type=jnp.float32)
            attn = _softmax(scores + mask)                     # (T, T)
            heads.append(jnp.dot(attn, v,
                                 preferred_element_type=jnp.float32))
        av = jnp.concatenate(heads, axis=-1)                   # (T, H)
        a = jnp.dot(av, P(f'wo{l}'),
                    preferred_element_type=jnp.float32) + P(f'bo{l}')

        # post-LN residual (norm_first=False); dropout = identity (eval)
        h = _layernorm(h + a, P(f'ln1g{l}'), P(f'ln1b{l}'))

        # feed-forward (ReLU, dim_feedforward = 4*H)
        ff = jnp.dot(h, P(f'w1{l}'),
                     preferred_element_type=jnp.float32) + P(f'b1{l}')
        ff = jnp.maximum(ff, 0.0)
        ff = jnp.dot(ff, P(f'w2{l}'),
                     preferred_element_type=jnp.float32) + P(f'b2{l}')
        h = _layernorm(h + ff, P(f'ln2g{l}'), P(f'ln2b{l}'))

    # last token of every folded sample -> (BATCH, H)
    h_last = jnp.concatenate(
        [h[(b + 1) * SEQ_LEN - 1:(b + 1) * SEQ_LEN, :] for b in range(BATCH)],
        axis=0)
    hid = jnp.maximum(
        jnp.dot(h_last, P('wh'),
                preferred_element_type=jnp.float32) + P('bh'), 0.0)
    out = jnp.dot(hid, P('wout'),
                  preferred_element_type=jnp.float32) + P('bout')  # (B, 128)
    o_ref[...] = out * P('scale') + P('shift')


# ------------------------------ host wrapper --------------------------------
def ik_forward(x, param_slab):
    # Fold batch into the token axis on the host (free layout plumbing).
    xf = x.reshape(TOKENS, INPUT_DIM)
    out_full = pl.pallas_call(
        ik_transformer_kernel,
        out_shape=jax.ShapeDtypeStruct((BATCH, OUT_PAD), jnp.float32),
        grid_spec=pltpu.PrefetchScalarGridSpec(
            num_scalar_prefetch=0,
            grid=(1,),                       # single step: no per-step overhead
            in_specs=[pl.BlockSpec((TOKENS, INPUT_DIM), lambda i: (0, 0)),
                      pl.BlockSpec((SLAB_ROWS, OUT_PAD), lambda i: (0, 0))],
            out_specs=pl.BlockSpec((BATCH, OUT_PAD), lambda i: (0, 0)),
        ),
        compiler_params=pltpu.CompilerParams(
            dimension_semantics=("arbitrary",)),
    )(xf, param_slab)
    # contiguous lane slice only (no strided-slice HLO)
    return out_full[:, :OUTPUT_DIM]


# ------------------- canonical params (mirror the PyTorch module) -----------
def make_params(key):
    ks = jax.random.split(key, 16)

    def w(k, shape, fan_in):
        return jax.random.normal(k, shape, jnp.float32) / np.sqrt(fan_in)

    def small(k, shape):
        return 0.05 * jax.random.normal(k, shape, jnp.float32)

    L, H, F = NUM_LAYERS, HIDDEN_DIM, FF_DIM
    w_emb = w(ks[0], (INPUT_DIM, H), INPUT_DIM)
    b_emb = small(ks[1], (1, H))
    wqkv = w(ks[2], (L, H, 3 * H), H)
    bqkv = small(ks[3], (L, 1, 3 * H))
    wo = w(ks[4], (L, H, H), H)
    bo = small(ks[5], (L, 1, H))
    ln1g = 1.0 + 0.1 * jax.random.normal(ks[6], (L, 1, H), jnp.float32)
    ln1b = small(ks[7], (L, 1, H))
    w1 = w(ks[8], (L, H, F), H)
    b1 = small(ks[9], (L, 1, F))
    w2 = w(ks[10], (L, F, H), F)
    b2 = small(ks[11], (L, 1, H))
    ln2g = 1.0 + 0.1 * jax.random.normal(ks[12], (L, 1, H), jnp.float32)
    ln2b = small(ks[13], (L, 1, H))
    wh = w(ks[14], (H, HEAD_HIDDEN), H)
    bh = jnp.zeros((1, HEAD_HIDDEN), jnp.float32)
    wout = w(ks[15], (HEAD_HIDDEN, OUTPUT_DIM), HEAD_HIDDEN)
    bout = jnp.zeros((1, OUTPUT_DIM), jnp.float32)

    # synthetic joint ranges (robot.jnt_ranges, shape (OUTPUT_DIM, 2))
    # TODO(synk): real Cobotta joint ranges come from the wrs robot object.
    jnt_lo = jnp.array([-2.6, -1.0, -2.0, -2.5, -1.5, -3.0], jnp.float32)
    jnt_hi = jnp.array([2.6, 1.7, 2.4, 2.5, 1.5, 3.0], jnp.float32)
    scale = (jnt_hi - jnt_lo).reshape(1, OUTPUT_DIM)
    shift = jnt_lo.reshape(1, OUTPUT_DIM)

    return [w_emb, b_emb, wqkv, bqkv, wo, bo, ln1g, ln1b,
            w1, b1, w2, b2, ln2g, ln2b, wh, bh, wout, bout, scale, shift]


# ------ host-side: pack everything into one pre-padded (SLAB_ROWS,128) slab --
def preprocess_params(params):
    (w_emb, b_emb, wqkv, bqkv, wo, bo, ln1g, ln1b,
     w1, b1, w2, b2, ln2g, ln2b, wh, bh, wout, bout, scale, shift) = params
    H = HIDDEN_DIM

    # fold the attention scale 1/sqrt(HEAD_DIM) into the Q projection
    inv = 1.0 / math.sqrt(HEAD_DIM)
    wqkv = wqkv.at[:, :, 0:H].multiply(inv)
    bqkv = bqkv.at[:, :, 0:H].multiply(inv)

    # block-diagonal attention mask (token i only attends within its sample)
    row = np.arange(TOKENS)[:, None] // SEQ_LEN
    col = np.arange(TOKENS)[None, :] // SEQ_LEN
    mask = np.where(row == col, 0.0, NEG_BIG).astype(np.float32)

    # lane-dense padded output head / joint-range affine
    wout_pad = np.zeros((HEAD_HIDDEN, OUT_PAD), np.float32)
    wout_pad[:, :OUTPUT_DIM] = np.asarray(wout)
    bout_pad = np.zeros((1, OUT_PAD), np.float32)
    bout_pad[:, :OUTPUT_DIM] = np.asarray(bout)
    scale_pad = np.ones((1, OUT_PAD), np.float32)
    scale_pad[:, :OUTPUT_DIM] = np.asarray(scale)
    shift_pad = np.zeros((1, OUT_PAD), np.float32)
    shift_pad[:, :OUTPUT_DIM] = np.asarray(shift)

    vals = {'w_emb': w_emb, 'b_emb': b_emb, 'mask': mask,
            'wh': wh, 'bh': bh, 'wout': wout_pad, 'bout': bout_pad,
            'scale': scale_pad, 'shift': shift_pad}
    for l in range(NUM_LAYERS):
        vals[f'wqkv{l}'] = wqkv[l]
        vals[f'bqkv{l}'] = bqkv[l]
        vals[f'wo{l}'] = wo[l]
        vals[f'bo{l}'] = bo[l]
        vals[f'ln1g{l}'] = ln1g[l]
        vals[f'ln1b{l}'] = ln1b[l]
        vals[f'w1{l}'] = w1[l]
        vals[f'b1{l}'] = b1[l]
        vals[f'w2{l}'] = w2[l]
        vals[f'b2{l}'] = b2[l]
        vals[f'ln2g{l}'] = ln2g[l]
        vals[f'ln2b{l}'] = ln2b[l]

    slab = np.zeros((SLAB_ROWS, OUT_PAD), np.float32)
    for name, rows, cols in _LAYOUT:
        arr = np.asarray(vals[name], np.float32).reshape(rows, cols)
        slab[OFF[name]:OFF[name] + rows, :cols] = arr
    return jnp.asarray(slab)


# ------------------------------ JAX reference -------------------------------
def reference_forward(x, params):
    (w_emb, b_emb, wqkv, bqkv, wo, bo, ln1g, ln1b,
     w1, b1, w2, b2, ln2g, ln2b, wh, bh, wout, bout, scale, shift) = params
    hi = jax.lax.Precision.HIGHEST

    def ln(v, g, b):
        mu = jnp.mean(v, -1, keepdims=True)
        var = jnp.mean((v - mu) ** 2, -1, keepdims=True)
        return (v - mu) / jnp.sqrt(var + LN_EPS) * g + b

    def single(xb):
        h = jnp.dot(xb, w_emb, precision=hi) + b_emb
        for l in range(NUM_LAYERS):
            qkv = jnp.dot(h, wqkv[l], precision=hi) + bqkv[l]
            q, k, v = jnp.split(qkv, 3, axis=-1)
            heads = []
            for hh in range(NUM_HEADS):
                sl = slice(hh * HEAD_DIM, (hh + 1) * HEAD_DIM)
                s = jnp.dot(q[:, sl], k[:, sl].T, precision=hi) / math.sqrt(HEAD_DIM)
                heads.append(jnp.dot(jax.nn.softmax(s, -1), v[:, sl], precision=hi))
            a = jnp.dot(jnp.concatenate(heads, -1), wo[l], precision=hi) + bo[l]
            h = ln(h + a, ln1g[l], ln1b[l])
            f = jnp.maximum(jnp.dot(h, w1[l], precision=hi) + b1[l], 0.0)
            f = jnp.dot(f, w2[l], precision=hi) + b2[l]
            h = ln(h + f, ln2g[l], ln2b[l])
        last = h[-1:, :]
        hid = jnp.maximum(jnp.dot(last, wh, precision=hi) + bh, 0.0)
        out = jnp.dot(hid, wout, precision=hi) + bout
        return (out * scale + shift)[0]

    return jax.vmap(single)(x)


# ---------------------------------- main -------------------------------------
if __name__ == "__main__":
    key = jax.random.PRNGKey(0)
    kx, kp = jax.random.split(key)
    x = jax.random.normal(kx, (BATCH, SEQ_LEN, INPUT_DIM), jnp.float32)
    params = make_params(kp)
    slab = preprocess_params(params)

    out = jax.jit(ik_forward)(x, slab)
    out = jax.block_until_ready(out)

    ref = reference_forward(x, params)
    assert out.shape == (BATCH, OUTPUT_DIM)
    assert np.allclose(np.asarray(out), np.asarray(ref), rtol=1e-2, atol=1e-2), (
        "pallas kernel disagrees with JAX reference")

    print("KERNEL_OK")
</pallas_src>

<mosaic_0001>
module attributes {stable_mosaic.version = 11 : i64} {
  func.func @ik_transformer_kernel(%arg0: i32, %arg1: memref<16x7xf32, #tpu.memory_space<vmem>>, %arg2: memref<736x128xf32, #tpu.memory_space<vmem>>, %arg3: memref<2x128xf32, #tpu.memory_space<vmem>>) attributes {dimension_semantics = [#tpu.dimension_semantics<arbitrary>], iteration_bounds = array<i64: 1>, scalar_prefetch = 0 : i64, scratch_operands = 0 : i64, tpu.core_type = #tpu.core_type<tc>, window_params = [{pipeline_mode = #tpu.pipeline_mode<synchronous>, transform_indices = @transform_0, window_bounds = array<i64: 16, 7>}, {pipeline_mode = #tpu.pipeline_mode<synchronous>, transform_indices = @transform_1, window_bounds = array<i64: 736, 128>}, {pipeline_mode = #tpu.pipeline_mode<synchronous>, transform_indices = @transform_2, window_bounds = array<i64: 2, 128>}]} {
    %c0 = arith.constant 0 : index
    %c0_0 = arith.constant 0 : index
    %0 = vector.load %arg1[%c0, %c0_0] : memref<16x7xf32, #tpu.memory_space<vmem>>, vector<16x7xf32>
    %c16 = arith.constant 16 : index
    %c0_1 = arith.constant 0 : index
    %1 = vector.load %arg2[%c16, %c0_1] : memref<736x128xf32, #tpu.memory_space<vmem>>, vector<16x16xf32>
    %c0_2 = arith.constant 0 : index
    %c0_3 = arith.constant 0 : index
    %2 = vector.load %arg2[%c0_2, %c0_3] : memref<736x128xf32, #tpu.memory_space<vmem>>, vector<7x32xf32>
    %cst = arith.constant dense<0.000000e+00> : vector<16x32xf32>
    %3 = tpu.matmul %0, %2, %cst {dimension_numbers = #tpu.dot_dimension_numbers<[1], [0], [0], [1], [0, 0, 1, 1], [], []>} : vector<16x7xf32>, vector<7x32xf32>, vector<16x32xf32> -> vector<16x32xf32>
    %c8 = arith.constant 8 : index
    %c0_4 = arith.constant 0 : index
    %4 = vector.load %arg2[%c8, %c0_4] : memref<736x128xf32, #tpu.memory_space<vmem>>, vector<1x32xf32>
    %5 = vector.broadcast %4 : vector<1x32xf32> to vector<16x32xf32>
    %6 = arith.addf %3, %5 : vector<16x32xf32>
    %c32 = arith.constant 32 : index
    %c0_5 = arith.constant 0 : index
    %7 = vector.load %arg2[%c32, %c0_5] : memref<736x128xf32, #tpu.memory_space<vmem>>, vector<32x96xf32>
    %cst_6 = arith.constant dense<0.000000e+00> : vector<16x96xf32>
    %8 = tpu.matmul %6, %7, %cst_6 {dimension_numbers = #tpu.dot_dimension_numbers<[1], [0], [0], [1], [0, 0, 1, 1], [], []>} : vector<16x32xf32>, vector<32x96xf32>, vector<16x96xf32> -> vector<16x96xf32>
    %c64 = arith.constant 64 : index
    %c0_7 = arith.constant 0 : index
    %9 = vector.load %arg2[%c64, %c0_7] : memref<736x128xf32, #tpu.memory_space<vmem>>, vector<1x96xf32>
    %10 = vector.broadcast %9 : vector<1x96xf32> to vector<16x96xf32>
    %11 = arith.addf %8, %10 : vector<16x96xf32>
    %12 = vector.extract_strided_slice %11 {offsets = [0, 0], sizes = [16, 8], strides = [1, 1]} : vector<16x96xf32> to vector<16x8xf32>
    %13 = vector.extract_strided_slice %11 {offsets = [0, 32], sizes = [16, 8], strides = [1, 1]} : vector<16x96xf32> to vector<16x8xf32>
    %14 = vector.extract_strided_slice %11 {offsets = [0, 64], sizes = [16, 8], strides = [1, 1]} : vector<16x96xf32> to vector<16x8xf32>
    %cst_8 = arith.constant dense<0.000000e+00> : vector<16x16xf32>
    %15 = tpu.matmul %12, %13, %cst_8 {dimension_numbers = #tpu.dot_dimension_numbers<[1], [1], [0], [0], [0, 0, 1, 0], [], []>} : vector<16x8xf32>, vector<16x8xf32>, vector<16x16xf32> -> vector<16x16xf32>
    %16 = arith.addf %15, %1 : vector<16x16xf32>
    %cst_9 = arith.constant dense<0xFF800000> : vector<16xf32>
    %17 = vector.multi_reduction <maximumf>, %16, %cst_9 [1] : vector<16x16xf32> to vector<16xf32>
    %18 = vector.shape_cast %17 : vector<16xf32> to vector<16x1xf32>
    %19 = vector.broadcast %18 : vector<16x1xf32> to vector<16x16xf32>
    %20 = arith.subf %16, %19 : vector<16x16xf32>
    %21 = math.exp %20 : vector<16x16xf32>
    %cst_10 = arith.constant dense<0.000000e+00> : vector<16xf32>
    %22 = vector.multi_reduction <add>, %21, %cst_10 [1] : vector<16x16xf32> to vector<16xf32>
    %23 = vector.shape_cast %22 : vector<16xf32> to vector<16x1xf32>
    %24 = tpu.reciprocal %23 {approx = true} : vector<16x1xf32> -> vector<16x1xf32>
    %25 = vector.broadcast %24 : vector<16x1xf32> to vector<16x16xf32>
    %26 = arith.mulf %21, %25 : vector<16x16xf32>
    %cst_11 = arith.constant dense<0.000000e+00> : vector<16x8xf32>
    %27 = tpu.matmul %26, %14, %cst_11 {dimension_numbers = #tpu.dot_dimension_numbers<[1], [0], [0], [1], [0, 0, 1, 1], [], []>} : vector<16x16xf32>, vector<16x8xf32>, vector<16x8xf32> -> vector<16x8xf32>
    %28 = vector.extract_strided_slice %11 {offsets = [0, 8], sizes = [16, 8], strides = [1, 1]} : vector<16x96xf32> to vector<16x8xf32>
    %29 = vector.extract_strided_slice %11 {offsets = [0, 40], sizes = [16, 8], strides = [1, 1]} : vector<16x96xf32> to vector<16x8xf32>
    %30 = vector.extract_strided_slice %11 {offsets = [0, 72], sizes = [16, 8], strides = [1, 1]} : vector<16x96xf32> to vector<16x8xf32>
    %cst_12 = arith.constant dense<0.000000e+00> : vector<16x16xf32>
    %31 = tpu.matmul %28, %29, %cst_12 {dimension_numbers = #tpu.dot_dimension_numbers<[1], [1], [0], [0], [0, 0, 1, 0], [], []>} : vector<16x8xf32>, vector<16x8xf32>, vector<16x16xf32> -> vector<16x16xf32>
    %32 = arith.addf %31, %1 : vector<16x16xf32>
    %cst_13 = arith.constant dense<0xFF800000> : vector<16xf32>
    %33 = vector.multi_reduction <maximumf>, %32, %cst_13 [1] : vector<16x16xf32> to vector<16xf32>
    %34 = vector.shape_cast %33 : vector<16xf32> to vector<16x1xf32>
    %35 = vector.broadcast %34 : vector<16x1xf32> to vector<16x16xf32>
    %36 = arith.subf %32, %35 : vector<16x16xf32>
    %37 = math.exp %36 : vector<16x16xf32>
    %cst_14 = arith.constant dense<0.000000e+00> : vector<16xf32>
    %38 = vector.multi_reduction <add>, %37, %cst_14 [1] : vector<16x16xf32> to vector<16xf32>
    %39 = vector.shape_cast %38 : vector<16xf32> to vector<16x1xf32>
    %40 = tpu.reciprocal %39 {approx = true} : vector<16x1xf32> -> vector<16x1xf32>
    %41 = vector.broadcast %40 : vector<16x1xf32> to vector<16x16xf32>
    %42 = arith.mulf %37, %41 : vector<16x16xf32>
    %cst_15 = arith.constant dense<0.000000e+00> : vector<16x8xf32>
    %43 = tpu.matmul %42, %30, %cst_15 {dimension_numbers = #tpu.dot_dimension_numbers<[1], [0], [0], [1], [0, 0, 1, 1], [], []>} : vector<16x16xf32>, vector<16x8xf32>, vector<16x8xf32> -> vector<16x8xf32>
    %44 = vector.extract_strided_slice %11 {offsets = [0, 16], sizes = [16, 8], strides = [1, 1]} : vector<16x96xf32> to vector<16x8xf32>
    %45 = vector.extract_strided_slice %11 {offsets = [0, 48], sizes = [16, 8], strides = [1, 1]} : vector<16x96xf32> to vector<16x8xf32>
    %46 = vector.extract_strided_slice %11 {offsets = [0, 80], sizes = [16, 8], strides = [1, 1]} : vector<16x96xf32> to vector<16x8xf32>
    %cst_16 = arith.constant dense<0.000000e+00> : vector<16x16xf32>
    %47 = tpu.matmul %44, %45, %cst_16 {dimension_numbers = #tpu.dot_dimension_numbers<[1], [1], [0], [0], [0, 0, 1, 0], [], []>} : vector<16x8xf32>, vector<16x8xf32>, vector<16x16xf32> -> vector<16x16xf32>
    %48 = arith.addf %47, %1 : vector<16x16xf32>
    %cst_17 = arith.constant dense<0xFF800000> : vector<16xf32>
    %49 = vector.multi_reduction <maximumf>, %48, %cst_17 [1] : vector<16x16xf32> to vector<16xf32>
    %50 = vector.shape_cast %49 : vector<16xf32> to vector<16x1xf32>
    %51 = vector.broadcast %50 : vector<16x1xf32> to vector<16x16xf32>
    %52 = arith.subf %48, %51 : vector<16x16xf32>
    %53 = math.exp %52 : vector<16x16xf32>
    %cst_18 = arith.constant dense<0.000000e+00> : vector<16xf32>
    %54 = vector.multi_reduction <add>, %53, %cst_18 [1] : vector<16x16xf32> to vector<16xf32>
    %55 = vector.shape_cast %54 : vector<16xf32> to vector<16x1xf32>
    %56 = tpu.reciprocal %55 {approx = true} : vector<16x1xf32> -> vector<16x1xf32>
    %57 = vector.broadcast %56 : vector<16x1xf32> to vector<16x16xf32>
    %58 = arith.mulf %53, %57 : vector<16x16xf32>
    %cst_19 = arith.constant dense<0.000000e+00> : vector<16x8xf32>
    %59 = tpu.matmul %58, %46, %cst_19 {dimension_numbers = #tpu.dot_dimension_numbers<[1], [0], [0], [1], [0, 0, 1, 1], [], []>} : vector<16x16xf32>, vector<16x8xf32>, vector<16x8xf32> -> vector<16x8xf32>
    %60 = vector.extract_strided_slice %11 {offsets = [0, 24], sizes = [16, 8], strides = [1, 1]} : vector<16x96xf32> to vector<16x8xf32>
    %61 = vector.extract_strided_slice %11 {offsets = [0, 56], sizes = [16, 8], strides = [1, 1]} : vector<16x96xf32> to vector<16x8xf32>
    %62 = vector.extract_strided_slice %11 {offsets = [0, 88], sizes = [16, 8], strides = [1, 1]} : vector<16x96xf32> to vector<16x8xf32>
    %cst_20 = arith.constant dense<0.000000e+00> : vector<16x16xf32>
    %63 = tpu.matmul %60, %61, %cst_20 {dimension_numbers = #tpu.dot_dimension_numbers<[1], [1], [0], [0], [0, 0, 1, 0], [], []>} : vector<16x8xf32>, vector<16x8xf32>, vector<16x16xf32> -> vector<16x16xf32>
    %64 = arith.addf %63, %1 : vector<16x16xf32>
    %cst_21 = arith.constant dense<0xFF800000> : vector<16xf32>
    %65 = vector.multi_reduction <maximumf>, %64, %cst_21 [1] : vector<16x16xf32> to vector<16xf32>
    %66 = vector.shape_cast %65 : vector<16xf32> to vector<16x1xf32>
    %67 = vector.broadcast %66 : vector<16x1xf32> to vector<16x16xf32>
    %68 = arith.subf %64, %67 : vector<16x16xf32>
    %69 = math.exp %68 : vector<16x16xf32>
    %cst_22 = arith.constant dense<0.000000e+00> : vector<16xf32>
    %70 = vector.multi_reduction <add>, %69, %cst_22 [1] : vector<16x16xf32> to vector<16xf32>
    %71 = vector.shape_cast %70 : vector<16xf32> to vector<16x1xf32>
    %72 = tpu.reciprocal %71 {approx = true} : vector<16x1xf32> -> vector<16x1xf32>
    %73 = vector.broadcast %72 : vector<16x1xf32> to vector<16x16xf32>
    %74 = arith.mulf %69, %73 : vector<16x16xf32>
    %cst_23 = arith.constant dense<0.000000e+00> : vector<16x8xf32>
    %75 = tpu.matmul %74, %62, %cst_23 {dimension_numbers = #tpu.dot_dimension_numbers<[1], [0], [0], [1], [0, 0, 1, 1], [], []>} : vector<16x16xf32>, vector<16x8xf32>, vector<16x8xf32> -> vector<16x8xf32>
    %76 = tpu.concatenate %27, %43, %59, %75 in 1 : vector<16x8xf32>, vector<16x8xf32>, vector<16x8xf32>, vector<16x8xf32> -> vector<16x32xf32>
    %c72 = arith.constant 72 : index
    %c0_24 = arith.constant 0 : index
    %77 = vector.load %arg2[%c72, %c0_24] : memref<736x128xf32, #tpu.memory_space<vmem>>, vector<32x32xf32>
    %cst_25 = arith.constant dense<0.000000e+00> : vector<16x32xf32>
    %78 = tpu.matmul %76, %77, %cst_25 {dimension_numbers = #tpu.dot_dimension_numbers<[1], [0], [0], [1], [0, 0, 1, 1], [], []>} : vector<16x32xf32>, vector<32x32xf32>, vector<16x32xf32> -> vector<16x32xf32>
    %c104 = arith.constant 104 : index
    %c0_26 = arith.constant 0 : index
    %79 = vector.load %arg2[%c104, %c0_26] : memref<736x128xf32, #tpu.memory_space<vmem>>, vector<1x32xf32>
    %80 = vector.broadcast %79 : vector<1x32xf32> to vector<16x32xf32>
    %81 = arith.addf %78, %80 : vector<16x32xf32>
    %82 = arith.addf %6, %81 : vector<16x32xf32>
    %c112 = arith.constant 112 : index
    %c0_27 = arith.constant 0 : index
    %83 = vector.load %arg2[%c112, %c0_27] : memref<736x128xf32, #tpu.memory_space<vmem>>, vector<1x32xf32>
    %c120 = arith.constant 120 : index
    %c0_28 = arith.constant 0 : index
    %84 = vector.load %arg2[%c120, %c0_28] : memref<736x128xf32, #tpu.memory_space<vmem>>, vector<1x32xf32>
    %cst_29 = arith.constant dense<0.000000e+00> : vector<16xf32>
    %85 = vector.multi_reduction <add>, %82, %cst_29 [1] : vector<16x32xf32> to vector<16xf32>
    %86 = vector.shape_cast %85 : vector<16xf32> to vector<16x1xf32>
    %cst_30 = arith.constant 3.200000e+01 : f32
    %87 = vector.broadcast %cst_30 : f32 to vector<16x1xf32>
    %88 = arith.divf %86, %87 : vector<16x1xf32>
    %89 = vector.broadcast %88 : vector<16x1xf32> to vector<16x32xf32>
    %90 = arith.subf %82, %89 : vector<16x32xf32>
    %91 = arith.mulf %90, %90 : vector<16x32xf32>
    %cst_31 = arith.constant dense<0.000000e+00> : vector<16xf32>
    %92 = vector.multi_reduction <add>, %91, %cst_31 [1] : vector<16x32xf32> to vector<16xf32>
    %93 = vector.shape_cast %92 : vector<16xf32> to vector<16x1xf32>
    %cst_32 = arith.constant 3.200000e+01 : f32
    %94 = vector.broadcast %cst_32 : f32 to vector<16x1xf32>
    %95 = arith.divf %93, %94 : vector<16x1xf32>
    %96 = vector.broadcast %88 : vector<16x1xf32> to vector<16x32xf32>
    %97 = arith.subf %82, %96 : vector<16x32xf32>
    %cst_33 = arith.constant 9.99999974E-6 : f32
    %98 = vector.broadcast %cst_33 : f32 to vector<16x1xf32>
    %99 = arith.addf %95, %98 : vector<16x1xf32>
    %100 = math.rsqrt %99 : vector<16x1xf32>
    %101 = vector.broadcast %100 : vector<16x1xf32> to vector<16x32xf32>
    %102 = arith.mulf %97, %101 : vector<16x32xf32>
    %103 = vector.broadcast %83 : vector<1x32xf32> to vector<16x32xf32>
    %104 = arith.mulf %102, %103 : vector<16x32xf32>
    %105 = vector.broadcast %84 : vector<1x32xf32> to vector<16x32xf32>
    %106 = arith.addf %104, %105 : vector<16x32xf32>
    %c128 = arith.constant 128 : index
    %c0_34 = arith.constant 0 : index
    %107 = vector.load %arg2[%c128, %c0_34] : memref<736x128xf32, #tpu.memory_space<vmem>>, vector<32x128xf32>
    %cst_35 = arith.constant dense<0.000000e+00> : vector<16x128xf32>
    %108 = tpu.matmul %106, %107, %cst_35 {dimension_numbers = #tpu.dot_dimension_numbers<[1], [0], [0], [1], [0, 0, 1, 1], [], []>} : vector<16x32xf32>, vector<32x128xf32>, vector<16x128xf32> -> vector<16x128xf32>
    %c160 = arith.constant 160 : index
    %c0_36 = arith.constant 0 : index
    %109 = vector.load %arg2[%c160, %c0_36] : memref<736x128xf32, #tpu.memory_space<vmem>>, vector<1x128xf32>
    %110 = vector.broadcast %109 : vector<1x128xf32> to vector<16x128xf32>
    %111 = arith.addf %108, %110 : vector<16x128xf32>
    %cst_37 = arith.constant 0.000000e+00 : f32
    %112 = vector.broadcast %cst_37 : f32 to vector<16x128xf32>
    %113 = arith.maximumf %111, %112 : vector<16x128xf32>
    %c168 = arith.constant 168 : index
    %c0_38 = arith.constant 0 : index
    %114 = vector.load %arg2[%c168, %c0_38] : memref<736x128xf32, #tpu.memory_space<vmem>>, vector<128x32xf32>
    %cst_39 = arith.constant dense<0.000000e+00> : vector<16x32xf32>
    %115 = tpu.matmul %113, %114, %cst_39 {dimension_numbers = #tpu.dot_dimension_numbers<[1], [0], [0], [1], [0, 0, 1, 1], [], []>} : vector<16x128xf32>, vector<128x32xf32>, vector<16x32xf32> -> vector<16x32xf32>
    %c296 = arith.constant 296 : index
    %c0_40 = arith.constant 0 : index
    %116 = vector.load %arg2[%c296, %c0_40] : memref<736x128xf32, #tpu.memory_space<vmem>>, vector<1x32xf32>
    %117 = vector.broadcast %116 : vector<1x32xf32> to vector<16x32xf32>
    %118 = arith.addf %115, %117 : vector<16x32xf32>
    %119 = arith.addf %106, %118 : vector<16x32xf32>
    %c304 = arith.constant 304 : index
    %c0_41 = arith.constant 0 : index
    %120 = vector.load %arg2[%c304, %c0_41] : memref<736x128xf32, #tpu.memory_space<vmem>>, vector<1x32xf32>
    %c312 = arith.constant 312 : index
    %c0_42 = arith.constant 0 : index
    %121 = vector.load %arg2[%c312, %c0_42] : memref<736x128xf32, #tpu.memory_space<vmem>>, vector<1x32xf32>
    %cst_43 = arith.constant dense<0.000000e+00> : vector<16xf32>
    %122 = vector.multi_reduction <add>, %119, %cst_43 [1] : vector<16x32xf32> to vector<16xf32>
    %123 = vector.shape_cast %122 : vector<16xf32> to vector<16x1xf32>
    %cst_44 = arith.constant 3.200000e+01 : f32
    %124 = vector.broadcast %cst_44 : f32 to vector<16x1xf32>
    %125 = arith.divf %123, %124 : vector<16x1xf32>
    %126 = vector.broadcast %125 : vector<16x1xf32> to vector<16x32xf32>
    %127 = arith.subf %119, %126 : vector<16x32xf32>
    %128 = arith.mulf %127, %127 : vector<16x32xf32>
    %cst_45 = arith.constant dense<0.000000e+00> : vector<16xf32>
    %129 = vector.multi_reduction <add>, %128, %cst_45 [1] : vector<16x32xf32> to vector<16xf32>
    %130 = vector.shape_cast %129 : vector<16xf32> to vector<16x1xf32>
    %cst_46 = arith.constant 3.200000e+01 : f32
    %131 = vector.broadcast %cst_46 : f32 to vector<16x1xf32>
    %132 = arith.divf %130, %131 : vector<16x1xf32>
    %133 = vector.broadcast %125 : vector<16x1xf32> to vector<16x32xf32>
    %134 = arith.subf %119, %133 : vector<16x32xf32>
    %cst_47 = arith.constant 9.99999974E-6 : f32
    %135 = vector.broadcast %cst_47 : f32 to vector<16x1xf32>
    %136 = arith.addf %132, %135 : vector<16x1xf32>
    %137 = math.rsqrt %136 : vector<16x1xf32>
    %138 = vector.broadcast %137 : vector<16x1xf32> to vector<16x32xf32>
    %139 = arith.mulf %134, %138 : vector<16x32xf32>
    %140 = vector.broadcast %120 : vector<1x32xf32> to vector<16x32xf32>
    %141 = arith.mulf %139, %140 : vector<16x32xf32>
    %142 = vector.broadcast %121 : vector<1x32xf32> to vector<16x32xf32>
    %143 = arith.addf %141, %142 : vector<16x32xf32>
    %c320 = arith.constant 320 : index
    %c0_48 = arith.constant 0 : index
    %144 = vector.load %arg2[%c320, %c0_48] : memref<736x128xf32, #tpu.memory_space<vmem>>, vector<32x96xf32>
    %cst_49 = arith.constant dense<0.000000e+00> : vector<16x96xf32>
    %145 = tpu.matmul %143, %144, %cst_49 {dimension_numbers = #tpu.dot_dimension_numbers<[1], [0], [0], [1], [0, 0, 1, 1], [], []>} : vector<16x32xf32>, vector<32x96xf32>, vector<16x96xf32> -> vector<16x96xf32>
    %c352 = arith.constant 352 : index
    %c0_50 = arith.constant 0 : index
    %146 = vector.load %arg2[%c352, %c0_50] : memref<736x128xf32, #tpu.memory_space<vmem>>, vector<1x96xf32>
    %147 = vector.broadcast %146 : vector<1x96xf32> to vector<16x96xf32>
    %148 = arith.addf %145, %147 : vector<16x96xf32>
    %149 = vector.extract_strided_slice %148 {offsets = [0, 0], sizes = [16, 8], strides = [1, 1]} : vector<16x96xf32> to vector<16x8xf32>
    %150 = vector.extract_strided_slice %148 {offsets = [0, 32], sizes = [16, 8], strides = [1, 1]} : vector<16x96xf32> to vector<16x8xf32>
    %151 = vector.extract_strided_slice %148 {offsets = [0, 64], sizes = [16, 8], strides = [1, 1]} : vector<16x96xf32> to vector<16x8xf32>
    %cst_51 = arith.constant dense<0.000000e+00> : vector<16x16xf32>
    %152 = tpu.matmul %149, %150, %cst_51 {dimension_numbers = #tpu.dot_dimension_numbers<[1], [1], [0], [0], [0, 0, 1, 0], [], []>} : vector<16x8xf32>, vector<16x8xf32>, vector<16x16xf32> -> vector<16x16xf32>
    %153 = arith.addf %152, %1 : vector<16x16xf32>
    %cst_52 = arith.constant dense<0xFF800000> : vector<16xf32>
    %154 = vector.multi_reduction <maximumf>, %153, %cst_52 [1] : vector<16x16xf32> to vector<16xf32>
    %155 = vector.shape_cast %154 : vector<16xf32> to vector<16x1xf32>
    %156 = vector.broadcast %155 : vector<16x1xf32> to vector<16x16xf32>
    %157 = arith.subf %153, %156 : vector<16x16xf32>
    %158 = math.exp %157 : vector<16x16xf32>
    %cst_53 = arith.constant dense<0.000000e+00> : vector<16xf32>
    %159 = vector.multi_reduction <add>, %158, %cst_53 [1] : vector<16x16xf32> to vector<16xf32>
    %160 = vector.shape_cast %159 : vector<16xf32> to vector<16x1xf32>
    %161 = tpu.reciprocal %160 {approx = true} : vector<16x1xf32> -> vector<16x1xf32>
    %162 = vector.broadcast %161 : vector<16x1xf32> to vector<16x16xf32>
    %163 = arith.mulf %158, %162 : vector<16x16xf32>
    %cst_54 = arith.constant dense<0.000000e+00> : vector<16x8xf32>
    %164 = tpu.matmul %163, %151, %cst_54 {dimension_numbers = #tpu.dot_dimension_numbers<[1], [0], [0], [1], [0, 0, 1, 1], [], []>} : vector<16x16xf32>, vector<16x8xf32>, vector<16x8xf32> -> vector<16x8xf32>
    %165 = vector.extract_strided_slice %148 {offsets = [0, 8], sizes = [16, 8], strides = [1, 1]} : vector<16x96xf32> to vector<16x8xf32>
    %166 = vector.extract_strided_slice %148 {offsets = [0, 40], sizes = [16, 8], strides = [1, 1]} : vector<16x96xf32> to vector<16x8xf32>
    %167 = vector.extract_strided_slice %148 {offsets = [0, 72], sizes = [16, 8], strides = [1, 1]} : vector<16x96xf32> to vector<16x8xf32>
    %cst_55 = arith.constant dense<0.000000e+00> : vector<16x16xf32>
    %168 = tpu.matmul %165, %166, %cst_55 {dimension_numbers = #tpu.dot_dimension_numbers<[1], [1], [0], [0], [0, 0, 1, 0], [], []>} : vector<16x8xf32>, vector<16x8xf32>, vector<16x16xf32> -> vector<16x16xf32>
    %169 = arith.addf %168, %1 : vector<16x16xf32>
    %cst_56 = arith.constant dense<0xFF800000> : vector<16xf32>
    %170 = vector.multi_reduction <maximumf>, %169, %cst_56 [1] : vector<16x16xf32> to vector<16xf32>
    %171 = vector.shape_cast %170 : vector<16xf32> to vector<16x1xf32>
    %172 = vector.broadcast %171 : vector<16x1xf32> to vector<16x16xf32>
    %173 = arith.subf %169, %172 : vector<16x16xf32>
    %174 = math.exp %173 : vector<16x16xf32>
    %cst_57 = arith.constant dense<0.000000e+00> : vector<16xf32>
    %175 = vector.multi_reduction <add>, %174, %cst_57 [1] : vector<16x16xf32> to vector<16xf32>
    %176 = vector.shape_cast %175 : vector<16xf32> to vector<16x1xf32>
    %177 = tpu.reciprocal %176 {approx = true} : vector<16x1xf32> -> vector<16x1xf32>
    %178 = vector.broadcast %177 : vector<16x1xf32> to vector<16x16xf32>
    %179 = arith.mulf %174, %178 : vector<16x16xf32>
    %cst_58 = arith.constant dense<0.000000e+00> : vector<16x8xf32>
    %180 = tpu.matmul %179, %167, %cst_58 {dimension_numbers = #tpu.dot_dimension_numbers<[1], [0], [0], [1], [0, 0, 1, 1], [], []>} : vector<16x16xf32>, vector<16x8xf32>, vector<16x8xf32> -> vector<16x8xf32>
    %181 = vector.extract_strided_slice %148 {offsets = [0, 16], sizes = [16, 8], strides = [1, 1]} : vector<16x96xf32> to vector<16x8xf32>
    %182 = vector.extract_strided_slice %148 {offsets = [0, 48], sizes = [16, 8], strides = [1, 1]} : vector<16x96xf32> to vector<16x8xf32>
    %183 = vector.extract_strided_slice %148 {offsets = [0, 80], sizes = [16, 8], strides = [1, 1]} : vector<16x96xf32> to vector<16x8xf32>
    %cst_59 = arith.constant dense<0.000000e+00> : vector<16x16xf32>
    %184 = tpu.matmul %181, %182, %cst_59 {dimension_numbers = #tpu.dot_dimension_numbers<[1], [1], [0], [0], [0, 0, 1, 0], [], []>} : vector<16x8xf32>, vector<16x8xf32>, vector<16x16xf32> -> vector<16x16xf32>
    %185 = arith.addf %184, %1 : vector<16x16xf32>
    %cst_60 = arith.constant dense<0xFF800000> : vector<16xf32>
    %186 = vector.multi_reduction <maximumf>, %185, %cst_60 [1] : vector<16x16xf32> to vector<16xf32>
    %187 = vector.shape_cast %186 : vector<16xf32> to vector<16x1xf32>
    %188 = vector.broadcast %187 : vector<16x1xf32> to vector<16x16xf32>
    %189 = arith.subf %185, %188 : vector<16x16xf32>
    %190 = math.exp %189 : vector<16x16xf32>
    %cst_61 = arith.constant dense<0.000000e+00> : vector<16xf32>
    %191 = vector.multi_reduction <add>, %190, %cst_61 [1] : vector<16x16xf32> to vector<16xf32>
    %192 = vector.shape_cast %191 : vector<16xf32> to vector<16x1xf32>
    %193 = tpu.reciprocal %192 {approx = true} : vector<16x1xf32> -> vector<16x1xf32>
    %194 = vector.broadcast %193 : vector<16x1xf32> to vector<16x16xf32>
    %195 = arith.mulf %190, %194 : vector<16x16xf32>
    %cst_62 = arith.constant dense<0.000000e+00> : vector<16x8xf32>
    %196 = tpu.matmul %195, %183, %cst_62 {dimension_numbers = #tpu.dot_dimension_numbers<[1], [0], [0], [1], [0, 0, 1, 1], [], []>} : vector<16x16xf32>, vector<16x8xf32>, vector<16x8xf32> -> vector<16x8xf32>
    %197 = vector.extract_strided_slice %148 {offsets = [0, 24], sizes = [16, 8], strides = [1, 1]} : vector<16x96xf32> to vector<16x8xf32>
    %198 = vector.extract_strided_slice %148 {offsets = [0, 56], sizes = [16, 8], strides = [1, 1]} : vector<16x96xf32> to vector<16x8xf32>
    %199 = vector.extract_strided_slice %148 {offsets = [0, 88], sizes = [16, 8], strides = [1, 1]} : vector<16x96xf32> to vector<16x8xf32>
    %cst_63 = arith.constant dense<0.000000e+00> : vector<16x16xf32>
    %200 = tpu.matmul %197, %198, %cst_63 {dimension_numbers = #tpu.dot_dimension_numbers<[1], [1], [0], [0], [0, 0, 1, 0], [], []>} : vector<16x8xf32>, vector<16x8xf32>, vector<16x16xf32> -> vector<16x16xf32>
    %201 = arith.addf %200, %1 : vector<16x16xf32>
    %cst_64 = arith.constant dense<0xFF800000> : vector<16xf32>
    %202 = vector.multi_reduction <maximumf>, %201, %cst_64 [1] : vector<16x16xf32> to vector<16xf32>
    %203 = vector.shape_cast %202 : vector<16xf32> to vector<16x1xf32>
    %204 = vector.broadcast %203 : vector<16x1xf32> to vector<16x16xf32>
    %205 = arith.subf %201, %204 : vector<16x16xf32>
    %206 = math.exp %205 : vector<16x16xf32>
    %cst_65 = arith.constant dense<0.000000e+00> : vector<16xf32>
    %207 = vector.multi_reduction <add>, %206, %cst_65 [1] : vector<16x16xf32> to vector<16xf32>
    %208 = vector.shape_cast %207 : vector<16xf32> to vector<16x1xf32>
    %209 = tpu.reciprocal %208 {approx = true} : vector<16x1xf32> -> vector<16x1xf32>
    %210 = vector.broadcast %209 : vector<16x1xf32> to vector<16x16xf32>
    %211 = arith.mulf %206, %210 : vector<16x16xf32>
    %cst_66 = arith.constant dense<0.000000e+00> : vector<16x8xf32>
    %212 = tpu.matmul %211, %199, %cst_66 {dimension_numbers = #tpu.dot_dimension_numbers<[1], [0], [0], [1], [0, 0, 1, 1], [], []>} : vector<16x16xf32>, vector<16x8xf32>, vector<16x8xf32> -> vector<16x8xf32>
    %213 = tpu.concatenate %164, %180, %196, %212 in 1 : vector<16x8xf32>, vector<16x8xf32>, vector<16x8xf32>, vector<16x8xf32> -> vector<16x32xf32>
    %c360 = arith.constant 360 : index
    %c0_67 = arith.constant 0 : index
    %214 = vector.load %arg2[%c360, %c0_67] : memref<736x128xf32, #tpu.memory_space<vmem>>, vector<32x32xf32>
    %cst_68 = arith.constant dense<0.000000e+00> : vector<16x32xf32>
    %215 = tpu.matmul %213, %214, %cst_68 {dimension_numbers = #tpu.dot_dimension_numbers<[1], [0], [0], [1], [0, 0, 1, 1], [], []>} : vector<16x32xf32>, vector<32x32xf32>, vector<16x32xf32> -> vector<16x32xf32>
    %c392 = arith.constant 392 : index
    %c0_69 = arith.constant 0 : index
    %216 = vector.load %arg2[%c392, %c0_69] : memref<736x128xf32, #tpu.memory_space<vmem>>, vector<1x32xf32>
    %217 = vector.broadcast %216 : vector<1x32xf32> to vector<16x32xf32>
    %218 = arith.addf %215, %217 : vector<16x32xf32>
    %219 = arith.addf %143, %218 : vector<16x32xf32>
    %c400 = arith.constant 400 : index
    %c0_70 = arith.constant 0 : index
    %220 = vector.load %arg2[%c400, %c0_70] : memref<736x128xf32, #tpu.memory_space<vmem>>, vector<1x32xf32>
    %c408 = arith.constant 408 : index
    %c0_71 = arith.constant 0 : index
    %221 = vector.load %arg2[%c408, %c0_71] : memref<736x128xf32, #tpu.memory_space<vmem>>, vector<1x32xf32>
    %cst_72 = arith.constant dense<0.000000e+00> : vector<16xf32>
    %222 = vector.multi_reduction <add>, %219, %cst_72 [1] : vector<16x32xf32> to vector<16xf32>
    %223 = vector.shape_cast %222 : vector<16xf32> to vector<16x1xf32>
    %cst_73 = arith.constant 3.200000e+01 : f32
    %224 = vector.broadcast %cst_73 : f32 to vector<16x1xf32>
    %225 = arith.divf %223, %224 : vector<16x1xf32>
    %226 = vector.broadcast %225 : vector<16x1xf32> to vector<16x32xf32>
    %227 = arith.subf %219, %226 : vector<16x32xf32>
    %228 = arith.mulf %227, %227 : vector<16x32xf32>
    %cst_74 = arith.constant dense<0.000000e+00> : vector<16xf32>
    %229 = vector.multi_reduction <add>, %228, %cst_74 [1] : vector<16x32xf32> to vector<16xf32>
    %230 = vector.shape_cast %229 : vector<16xf32> to vector<16x1xf32>
    %cst_75 = arith.constant 3.200000e+01 : f32
    %231 = vector.broadcast %cst_75 : f32 to vector<16x1xf32>
    %232 = arith.divf %230, %231 : vector<16x1xf32>
    %233 = vector.broadcast %225 : vector<16x1xf32> to vector<16x32xf32>
    %234 = arith.subf %219, %233 : vector<16x32xf32>
    %cst_76 = arith.constant 9.99999974E-6 : f32
    %235 = vector.broadcast %cst_76 : f32 to vector<16x1xf32>
    %236 = arith.addf %232, %235 : vector<16x1xf32>
    %237 = math.rsqrt %236 : vector<16x1xf32>
    %238 = vector.broadcast %237 : vector<16x1xf32> to vector<16x32xf32>
    %239 = arith.mulf %234, %238 : vector<16x32xf32>
    %240 = vector.broadcast %220 : vector<1x32xf32> to vector<16x32xf32>
    %241 = arith.mulf %239, %240 : vector<16x32xf32>
    %242 = vector.broadcast %221 : vector<1x32xf32> to vector<16x32xf32>
    %243 = arith.addf %241, %242 : vector<16x32xf32>
    %c416 = arith.constant 416 : index
    %c0_77 = arith.constant 0 : index
    %244 = vector.load %arg2[%c416, %c0_77] : memref<736x128xf32, #tpu.memory_space<vmem>>, vector<32x128xf32>
    %cst_78 = arith.constant dense<0.000000e+00> : vector<16x128xf32>
    %245 = tpu.matmul %243, %244, %cst_78 {dimension_numbers = #tpu.dot_dimension_numbers<[1], [0], [0], [1], [0, 0, 1, 1], [], []>} : vector<16x32xf32>, vector<32x128xf32>, vector<16x128xf32> -> vector<16x128xf32>
    %c448 = arith.constant 448 : index
    %c0_79 = arith.constant 0 : index
    %246 = vector.load %arg2[%c448, %c0_79] : memref<736x128xf32, #tpu.memory_space<vmem>>, vector<1x128xf32>
    %247 = vector.broadcast %246 : vector<1x128xf32> to vector<16x128xf32>
    %248 = arith.addf %245, %247 : vector<16x128xf32>
    %cst_80 = arith.constant 0.000000e+00 : f32
    %249 = vector.broadcast %cst_80 : f32 to vector<16x128xf32>
    %250 = arith.maximumf %248, %249 : vector<16x128xf32>
    %c456 = arith.constant 456 : index
    %c0_81 = arith.constant 0 : index
    %251 = vector.load %arg2[%c456, %c0_81] : memref<736x128xf32, #tpu.memory_space<vmem>>, vector<128x32xf32>
    %cst_82 = arith.constant dense<0.000000e+00> : vector<16x32xf32>
    %252 = tpu.matmul %250, %251, %cst_82 {dimension_numbers = #tpu.dot_dimension_numbers<[1], [0], [0], [1], [0, 0, 1, 1], [], []>} : vector<16x128xf32>, vector<128x32xf32>, vector<16x32xf32> -> vector<16x32xf32>
    %c584 = arith.constant 584 : index
    %c0_83 = arith.constant 0 : index
    %253 = vector.load %arg2[%c584, %c0_83] : memref<736x128xf32, #tpu.memory_space<vmem>>, vector<1x32xf32>
    %254 = vector.broadcast %253 : vector<1x32xf32> to vector<16x32xf32>
    %255 = arith.addf %252, %254 : vector<16x32xf32>
    %256 = arith.addf %243, %255 : vector<16x32xf32>
    %c592 = arith.constant 592 : index
    %c0_84 = arith.constant 0 : index
    %257 = vector.load %arg2[%c592, %c0_84] : memref<736x128xf32, #tpu.memory_space<vmem>>, vector<1x32xf32>
    %c600 = arith.constant 600 : index
    %c0_85 = arith.constant 0 : index
    %258 = vector.load %arg2[%c600, %c0_85] : memref<736x128xf32, #tpu.memory_space<vmem>>, vector<1x32xf32>
    %cst_86 = arith.constant dense<0.000000e+00> : vector<16xf32>
    %259 = vector.multi_reduction <add>, %256, %cst_86 [1] : vector<16x32xf32> to vector<16xf32>
    %260 = vector.shape_cast %259 : vector<16xf32> to vector<16x1xf32>
    %cst_87 = arith.constant 3.200000e+01 : f32
    %261 = vector.broadcast %cst_87 : f32 to vector<16x1xf32>
    %262 = arith.divf %260, %261 : vector<16x1xf32>
    %263 = vector.broadcast %262 : vector<16x1xf32> to vector<16x32xf32>
    %264 = arith.subf %256, %263 : vector<16x32xf32>
    %265 = arith.mulf %264, %264 : vector<16x32xf32>
    %cst_88 = arith.constant dense<0.000000e+00> : vector<16xf32>
    %266 = vector.multi_reduction <add>, %265, %cst_88 [1] : vector<16x32xf32> to vector<16xf32>
    %267 = vector.shape_cast %266 : vector<16xf32> to vector<16x1xf32>
    %cst_89 = arith.constant 3.200000e+01 : f32
    %268 = vector.broadcast %cst_89 : f32 to vector<16x1xf32>
    %269 = arith.divf %267, %268 : vector<16x1xf32>
    %270 = vector.broadcast %262 : vector<16x1xf32> to vector<16x32xf32>
    %271 = arith.subf %256, %270 : vector<16x32xf32>
    %cst_90 = arith.constant 9.99999974E-6 : f32
    %272 = vector.broadcast %cst_90 : f32 to vector<16x1xf32>
    %273 = arith.addf %269, %272 : vector<16x1xf32>
    %274 = math.rsqrt %273 : vector<16x1xf32>
    %275 = vector.broadcast %274 : vector<16x1xf32> to vector<16x32xf32>
    %276 = arith.mulf %271, %275 : vector<16x32xf32>
    %277 = vector.broadcast %257 : vector<1x32xf32> to vector<16x32xf32>
    %278 = arith.mulf %276, %277 : vector<16x32xf32>
    %279 = vector.broadcast %258 : vector<1x32xf32> to vector<16x32xf32>
    %280 = arith.addf %278, %279 : vector<16x32xf32>
    %281 = vector.extract_strided_slice %280 {offsets = [7, 0], sizes = [1, 32], strides = [1, 1]} : vector<16x32xf32> to vector<1x32xf32>
    %282 = vector.extract_strided_slice %280 {offsets = [15, 0], sizes = [1, 32], strides = [1, 1]} : vector<16x32xf32> to vector<1x32xf32>
    %283 = tpu.concatenate %281, %282 in 0 : vector<1x32xf32>, vector<1x32xf32> -> vector<2x32xf32>
    %c608 = arith.constant 608 : index
    %c0_91 = arith.constant 0 : index
    %284 = vector.load %arg2[%c608, %c0_91] : memref<736x128xf32, #tpu.memory_space<vmem>>, vector<32x64xf32>
    %cst_92 = arith.constant dense<0.000000e+00> : vector<2x64xf32>
    %285 = tpu.matmul %283, %284, %cst_92 {dimension_numbers = #tpu.dot_dimension_numbers<[1], [0], [0], [1], [0, 0, 1, 1], [], []>} : vector<2x32xf32>, vector<32x64xf32>, vector<2x64xf32> -> vector<2x64xf32>
    %c640 = arith.constant 640 : index
    %c0_93 = arith.constant 0 : index
    %286 = vector.load %arg2[%c640, %c0_93] : memref<736x128xf32, #tpu.memory_space<vmem>>, vector<1x64xf32>
    %287 = vector.broadcast %286 : vector<1x64xf32> to vector<2x64xf32>
    %288 = arith.addf %285, %287 : vector<2x64xf32>
    %cst_94 = arith.constant 0.000000e+00 : f32
    %289 = vector.broadcast %cst_94 : f32 to vector<2x64xf32>
    %290 = arith.maximumf %288, %289 : vector<2x64xf32>
    %c648 = arith.constant 648 : index
    %c0_95 = arith.constant 0 : index
    %291 = vector.load %arg2[%c648, %c0_95] : memref<736x128xf32, #tpu.memory_space<vmem>>, vector<64x128xf32>
    %cst_96 = arith.constant dense<0.000000e+00> : vector<2x128xf32>
    %292 = tpu.matmul %290, %291, %cst_96 {dimension_numbers = #tpu.dot_dimension_numbers<[1], [0], [0], [1], [0, 0, 1, 1], [], []>} : vector<2x64xf32>, vector<64x128xf32>, vector<2x128xf32> -> vector<2x128xf32>
    %c712 = arith.constant 712 : index
    %c0_97 = arith.constant 0 : index
    %293 = vector.load %arg2[%c712, %c0_97] : memref<736x128xf32, #tpu.memory_space<vmem>>, vector<1x128xf32>
    %294 = vector.broadcast %293 : vector<1x128xf32> to vector<2x128xf32>
    %295 = arith.addf %292, %294 : vector<2x128xf32>
    %c720 = arith.constant 720 : index
    %c0_98 = arith.constant 0 : index
    %296 = vector.load %arg2[%c720, %c0_98] : memref<736x128xf32, #tpu.memory_space<vmem>>, vector<1x128xf32>
    %297 = vector.broadcast %296 : vector<1x128xf32> to vector<2x128xf32>
    %298 = arith.mulf %295, %297 : vector<2x128xf32>
    %c728 = arith.constant 728 : index
    %c0_99 = arith.constant 0 : index
    %299 = vector.load %arg2[%c728, %c0_99] : memref<736x128xf32, #tpu.memory_space<vmem>>, vector<1x128xf32>
    %300 = vector.broadcast %299 : vector<1x128xf32> to vector<2x128xf32>
    %301 = arith.addf %298, %300 : vector<2x128xf32>
    %c0_100 = arith.constant 0 : index
    %c0_101 = arith.constant 0 : index
    %302 = vector.load %arg3[%c0_100, %c0_101] : memref<2x128xf32, #tpu.memory_space<vmem>>, vector<2x128xf32>
    tpu.vector_store %arg3[%c0_100, %c0_101], %301 {strides = array<i32>} : memref<2x128xf32, #tpu.memory_space<vmem>>, vector<2x128xf32>,
    return
  }
  func.func @transform_0(%arg0: i32) -> (i32, i32) {
    %c0_i32 = arith.constant 0 : i32
    %c0_i32_0 = arith.constant 0 : i32
    %c0_i32_1 = arith.constant 0 : i32
    return %c0_i32, %c0_i32_0 : i32, i32
  }
  func.func @transform_1(%arg0: i32) -> (i32, i32) {
    %c0_i32 = arith.constant 0 : i32
    %c0_i32_0 = arith.constant 0 : i32
    %c0_i32_1 = arith.constant 0 : i32
    return %c0_i32, %c0_i32_0 : i32, i32
  }
  func.func @transform_2(%arg0: i32) -> (i32, i32) {
    %c0_i32 = arith.constant 0 : i32
    %c0_i32_0 = arith.constant 0 : i32
    %c0_i32_1 = arith.constant 0 : i32
    return %c0_i32, %c0_i32_0 : i32, i32
  }
}

</mosaic_0001>

<bundles_post_ra>
// kernel: ik_forward.1
= control target key start
LH: loop header
LB: loop body
LE: loop exit
PB: predicated region body
PF: predicated region fallthrough
CT: control target
= control target key end

     0   :  { %7 = vsyncpa [#allocation3], 0  ;;  %s2103_s0 = inlined_call_operand.vmem [shape: f32[16,7], index: 0, kind: input, shape index: {}]   ;;  %s2104_s1 = inlined_call_operand.hbm [shape: f32[736,128], index: 1, kind: input, shape index: {}]   ;;  %s2105_s2 = inlined_call_operand.hbm [shape: f32[2,128], index: 2, kind: output, shape index: {}]  }
   0x1   :  { %8 = vsyncpa [#allocation4], 0  ;;  %s15_s11 = sshll.u32 %s2104_s1, 4  ;;  %s1792_s12 = smov [#allocation2]   ;;  %s16_s11 = int_to_ptr.hbm [resolvable:$true] %s15_s11 }
   0x2   :  { %s17_s13 = sshll.u32 %s1792_s12, 4  ;;  %s1793_s14 = smov 128   ;;  %s18_s13 = int_to_ptr.vmem [resolvable:$true] %s17_s13 }
   0x3   :  { %s1794_s15 = smov 8  }
   0x4   :  { %23 = dma.hbm_to_vmem [thread:$0]  %s16_s11, 11776, %s18_s13, [#allocation3], %s1793_s14, %s1793_s14, %s1794_s15  }
   0x5   :  { %1788 = dma.done.wait [#allocation3], 11776  }
   0x6   :  { %1789 = vsyncadd [#allocation3], 4294955520  ;;  %vm42_vm0 = vcmask 1046528   ;;  %vm35_vm1 = vcmask 56320   ;;  %v32_v0 = vld [vmem:[#allocation2] sm:$0x7f] }
   0x7   :  { %v28_v1 = vld [vmem:[%s2103_s0] sm:$0xff]  ;;  %1512 = vmatpush.msk.msra.mxu0 %vm42_vm0, %v32_v0  ;;  %v72_v2 = vld [vmem:[#allocation2 + $0x38] sm:$0xff]  ;;  %v71_v3 = vld [vmem:[#allocation2 + $0x30] sm:$0xff]  ;;  %vm75_vm2 = vcmask 261120   ;;  %s1796_s19 = smov 96   ;;  %s1797_s20 = smov 80  }
   0x8   :  { %1513 = vmatmul.msk.f32.vlgmr.msra.gmra.mxu0 %vm35_vm1, %v28_v1  ;;  %94 = vmatpush.msra.mxu1 %v72_v2  ;;  %v29_v4 = vld [vmem:[%s2103_s0 + $0x8] sm:$0xff]  ;;  %v69_v6 = vld [vmem:[#allocation2 + $0x20] sm:$0xff]  ;;  %s1795_s0 = smov 88   ;;  %s1798_s21 = smov 72   ;;  %vm111_vm3 = vcmask 64512   ;;  %v1862_v28 = vld [vmem:[#allocation2 + $0x10] sm:$0xff] }
   0x9   :  { %v70_v5 = vld [vmem:[#allocation2 + $0x28] sm:$0xff]  ;;  %v1638_v12 = vld [vmem:[#allocation2 + $0x40] ss:$0 sm:$0xff]  ;;  %s1799_s22 = smov 120   ;;  %s1800_s23 = smov 64   ;;  %vm143_vm4 = vcmask 130048  }
   0xa   :  { %95 = vmatpush.msra.mxu1 %v71_v3  ;;  %v1637_v7 = vld [vmem:[#allocation2 + $0x8] ss:$0 sm:$0xff]  ;;  %s1801_s24 = smov 104   ;;  %s1802_s25 = smov 112   ;;  %v1880_v43 = vld [vmem:[#allocation2 + $0x18] sm:$0xff]  ;;  %vm517_vm5 = vcmask 195584  }
   0xb   :  { %s1803_s26 = smov 56   ;;  %s1804_s27 = smov 40  }
   0xc   :  { %96 = vmatpush.msra.mxu1 %v70_v5  ;;  %s1805_s28 = smov 48   ;;  %s1806_s29 = smov 24  }
   0xd   :  { %s1807_s30 = smov 16   ;;  %s1809_s3 = smov [#allocation5]  }
   0xe   :  { %97 = vmatpush.msra.mxu1 %v69_v6  ;;  %s1500_s4 = sshll.u32 %s1809_s3, 4  ;;  %s1502_s7 = sshll.u32 %s2105_s2, 4  ;;  %s1501_s4 = int_to_ptr.vmem [resolvable:$true] %s1500_s4  ;;  %s1503_s7 = int_to_ptr.hbm [resolvable:$true] %s1502_s7 }
  0x10   :  { %1514 = vmatmul.msk.f32.gmra.mxu0 %vm35_vm1, %v29_v4 }
  0x85   :  { %v63_v8 = vpop.f32.mrf.mxu0 }
  0x86   :  { %v1835_v9 = vadd.f32 %v1637_v7, %v63_v8 }
  0x88   :  { %1515 = vmatmul.msk.f32.vlgmr.msra.gmra.mxu1 %vm75_vm2, %v1835_v9 }
  0x8d   :  { %v66_v10 = vpop.f32.mrf.mxu0 }
  0x8e   :  { %v1839_v11 = vadd.f32 %v1637_v7, %v66_v10 }
  0x90   :  { %1516 = vmatmul.msk.f32.gmra.mxu1 %vm75_vm2, %v1839_v11 }
 0x105   :  { %v99_v13 = vpop.f32.mrf.mxu1 }
 0x106   :  { %v100_v14 = vadd.f32 %v1638_v12, %v99_v13 }
 0x108   :  { %205 = vrot.lane.b32.xlu2 %v100_v14, %s1795_s0 }
 0x10d   :  { %v102_v15 = vpop.f32.mrf.mxu1 }
 0x10e   :  { %v103_v16 = vadd.f32 %v1638_v12, %v102_v15 }
 0x110   :  { %109 = vrot.lane.b32.xlu0 %v103_v16, %s1796_s19  ;;  %303 = vrot.lane.b32.xlu2 %v103_v16, %s1797_s20  ;;  %v1849_v17 = vpack.i.bf16 %v100_v14, %v103_v16 }
 0x118   :  { %397 = vrot.lane.b32.xlu2 %v100_v14, %s1798_s21  ;;  %107 = vrot.lane.b32.xlu0 %v100_v14, %s1796_s19 }
 0x120   :  { %201 = vrot.lane.b32.xlu0 %v100_v14, %s1799_s22 }
 0x128   :  { %1598 = vrot.lane.b32.xlu0 %v1849_v17, %s1800_s23 }
 0x130   :  { %203 = vrot.lane.b32.xlu0 %v103_v16, %s1799_s22 }
 0x138   :  { %301 = vrot.lane.b32.xlu0 %v100_v14, %s1797_s20 }
 0x140   :  { %393 = vrot.lane.b32.xlu0 %v100_v14, %s1801_s24 }
 0x162   :  { %v206_v21 = vpop.permute.xlu2 %205 }
 0x16a   :  { %v304_v25 = vpop.permute.xlu2 %303 }
 0x172   :  { %v398_v39 = vpop.permute.xlu2 %397 }
 0x182   :  { %v110_v18 = vpop.permute.xlu0 %109 }
 0x183   :  { %1517 = vmatpush.xpose.msk.msra.mxu2 %vm111_vm3, %v110_v18 }
 0x18a   :  { %v108_v19 = vpop.permute.xlu0 %107 }
 0x18b   :  { %1518 = vmatpush.xpose.msk.msra.mxu2 %vm111_vm3, %v108_v19 }
 0x18e   :  { %1519 = vmatmul.msk.f32.vlgmr.msra.gmra.mxu2 %vm111_vm3, %v100_v14 }
 0x192   :  { %v202_v20 = vpop.permute.xlu0 %201 }
 0x196   :  { %1520 = vmatmul.msk.f32.gmra.mxu2 %vm111_vm3, %v103_v16 }
 0x19a   :  { %v1599_v22 = vpop.permute.xlu0 %1598 }
 0x19b   :  { %v1600_v23 = vunpack.i.l.bf16 %v1599_v22  ;;  %v1601_v24 = vunpack.i.h.bf16 %v1599_v22 }
 0x19d   :  { %192 = vmatpush.msrb.mxu1 %v1600_v23  ;;  %1577 = vmatpush.msrb.mxu2 %v1600_v23 }
 0x19f   :  { %193 = vmatpush.msrb.mxu1 %v1601_v24  ;;  %1578 = vmatpush.msrb.mxu2 %v1601_v24 }
 0x1a1   :  { %1529 = vmatpush.xpose.msk.msra.mxu1 %vm111_vm3, %v304_v25 }
 0x1a2   :  { %v204_v26 = vpop.permute.xlu0 %203 }
 0x1aa   :  { %v302_v27 = vpop.permute.xlu0 %301 }
 0x1ab   :  { %1530 = vmatpush.xpose.msk.msra.mxu1 %vm111_vm3, %v302_v27 }
 0x1b2   :  { %v394_v41 = vpop.permute.xlu0 %393 }
 0x211   :  { %v137_v29 = vpop.f32.mrf.mxu2 }
 0x212   :  { %v138_v30 = vadd.f32 %v137_v29, %v1862_v28 }
 0x214   :  { %v144_v31 = vsel %vm143_vm4, %v138_v30, -inf }
 0x215   :  { %145 = vmax.xlane.f32.xlu1 %v144_v31 }
 0x219   :  { %v140_v44 = vpop.f32.mrf.mxu2 }
 0x21a   :  { %v141_v45 = vadd.f32 %v140_v44, %v1880_v43 }
 0x21c   :  { %v147_v46 = vsel %vm143_vm4, %v141_v45, -inf }
 0x22e   :  { %207 = vrot.lane.b32.xlu1 %v103_v16, %s1795_s0 }
 0x236   :  { %399 = vrot.lane.b32.xlu1 %v103_v16, %s1798_s21 }
 0x23e   :  { %297 = vrot.lane.b32.xlu1 %v100_v14, %s1802_s25 }
 0x246   :  { %395 = vrot.lane.b32.xlu1 %v103_v16, %s1801_s24 }
 0x288   :  { %v146_v32 = vpop.xlane.xlu1 %145 }
 0x289   :  { %v150_v33 = vsub.f32 %v138_v30, %v146_v32 }
 0x28b   :  { %v152_v34 = vmul.f32 1.442695, %v150_v33 }
 0x28d   :  { %1658 = vpow2.f32 %v152_v34 }
 0x293   :  { %v1659_v35 = vpop.eup %1658 }
 0x294   :  { %v156_v36 = vsel %vm143_vm4, %v1659_v35, 0.0 }
 0x295   :  { %157 = vadd.xlane.f32.xlu2 %v156_v36 }
 0x2a0   :  { %v208_v37 = vpop.permute.xlu1 %207 }
 0x2a1   :  { %1523 = vmatpush.xpose.msk.msrb.mxu0 %vm111_vm3, %v208_v37 }
 0x2a5   :  { %1524 = vmatpush.xpose.msk.msrb.mxu0 %vm111_vm3, %v206_v21 }
 0x2a8   :  { %v400_v38 = vpop.permute.xlu1 %399  ;;  %1525 = vmatmul.msk.f32.vlgmr.msrb.gmra.mxu0 %vm111_vm3, %v202_v20 }
 0x2a9   :  { %1535 = vmatpush.xpose.msk.msra.mxu0 %vm111_vm3, %v400_v38 }
 0x2ad   :  { %299 = vrot.lane.b32.xlu2 %v103_v16, %s1802_s25  ;;  %1536 = vmatpush.xpose.msk.msra.mxu0 %vm111_vm3, %v398_v39 }
 0x2b0   :  { %1526 = vmatmul.msk.f32.gmra.mxu0 %vm111_vm3, %v204_v26  ;;  %v298_v40 = vpop.permute.xlu1 %297 }
 0x2b8   :  { %1537 = vmatmul.msk.f32.vlgmr.msra.gmra.mxu0 %vm111_vm3, %v394_v41  ;;  %v396_v42 = vpop.permute.xlu1 %395 }
 0x2c0   :  { %1538 = vmatmul.msk.f32.gmra.mxu0 %vm111_vm3, %v396_v42 }
 0x2d6   :  { %148 = vmax.xlane.f32.xlu2 %v147_v46 }
 0x308   :  { %v158_v47 = vpop.xlane.xlu2 %157 }
 0x309   :  { %1660 = vrcp.f32 %v158_v47 }
 0x30f   :  { %v1661_v48 = vpop.eup %1660 }
 0x310   :  { %v164_v49 = vmul.f32 %v1661_v48, %v1659_v35  ;;  %v300_v50 = vpop.permute.xlu2 %299 }
 0x312   :  { %1521 = vmatmul.msk.f32.vlgmr.msrb.gmra.mxu1 %vm143_vm4, %v164_v49 }
 0x31a   :  { %1531 = vmatmul.msk.f32.vlgmr.msra.gmra.mxu1 %vm111_vm3, %v298_v40 }
 0x322   :  { %1532 = vmatmul.msk.f32.gmra.mxu1 %vm111_vm3, %v300_v50 }
 0x325   :  { %v234_v51 = vpop.f32.mrf.mxu0 }
 0x326   :  { %v235_v52 = vadd.f32 %v234_v51, %v1862_v28 }
 0x328   :  { %v240_v53 = vsel %vm143_vm4, %v235_v52, -inf }
 0x329   :  { %241 = vmax.xlane.f32.xlu0 %v240_v53 }
 0x32d   :  { %v237_v54 = vpop.f32.mrf.mxu0 }
 0x32e   :  { %v238_v55 = vadd.f32 %v237_v54, %v1880_v43 }
 0x330   :  { %v243_v56 = vsel %vm143_vm4, %v238_v55, -inf }
 0x331   :  { %244 = vmax.xlane.f32.xlu1 %v243_v56 }
 0x335   :  { %v426_v57 = vpop.f32.mrf.mxu0 }
 0x336   :  { %v427_v58 = vadd.f32 %v426_v57, %v1862_v28 }
 0x338   :  { %v432_v59 = vsel %vm143_vm4, %v427_v58, -inf }
 0x339   :  { %433 = vmax.xlane.f32.xlu0 %v432_v59 }
 0x33d   :  { %v429_v2 = vpop.f32.mrf.mxu0 }
 0x33e   :  { %v430_v6 = vadd.f32 %v429_v2, %v1880_v43 }
 0x340   :  { %v435_v13 = vsel %vm143_vm4, %v430_v6, -inf }
 0x349   :  { %v149_v61 = vpop.xlane.xlu2 %148 }
 0x34a   :  { %v151_v63 = vsub.f32 %v141_v45, %v149_v61 }
 0x34c   :  { %v154_v3 = vmul.f32 1.442695, %v151_v63 }
 0x34e   :  { %1662 = vpow2.f32 %v154_v3 }
 0x354   :  { %v1663_v16 = vpop.eup %1662 }
 0x355   :  { %v159_v21 = vsel %vm143_vm4, %v1663_v16, 0.0 }
 0x38f   :  { %v1893_v60 = vpop.f32.mrf.mxu1 }
 0x397   :  { %v330_v62 = vpop.f32.mrf.mxu1 }
 0x398   :  { %v331_v0 = vadd.f32 %v330_v62, %v1862_v28 }
 0x39a   :  { %v336_v1 = vsel %vm143_vm4, %v331_v0, -inf }
 0x39b   :  { %337 = vmax.xlane.f32.xlu2 %v336_v1 }
 0x39c   :  { %v242_v4 = vpop.xlane.xlu0 %241 }
 0x39d   :  { %v246_v5 = vsub.f32 %v235_v52, %v242_v4 }
 0x39f   :  { %v248_v7 = vmul.f32 1.442695, %v246_v5  ;;  %v333_v8 = vpop.f32.mrf.mxu1 }
 0x3a0   :  { %v334_v10 = vadd.f32 %v333_v8, %v1880_v43 }
 0x3a1   :  { %1664 = vpow2.f32 %v248_v7 }
 0x3a2   :  { %v339_v12 = vsel %vm143_vm4, %v334_v10, -inf }
 0x3a3   :  { %340 = vmax.xlane.f32.xlu1 %v339_v12  ;;  %436 = vmax.xlane.f32.xlu2 %v435_v13 }
 0x3a4   :  { %v245_v14 = vpop.xlane.xlu1 %244 }
 0x3a5   :  { %v247_v15 = vsub.f32 %v238_v55, %v245_v14 }
 0x3a7   :  { %v1665_v18 = vpop.eup %1664  ;;  %v250_v19 = vmul.f32 1.442695, %v247_v15 }
 0x3a8   :  { %v252_v20 = vsel %vm143_vm4, %v1665_v18, 0.0 }
 0x3a9   :  { %1666 = vpow2.f32 %v250_v19  ;;  %253 = vadd.xlane.f32.xlu0 %v252_v20 }
 0x3ab   :  { %160 = vadd.xlane.f32.xlu1 %v159_v21 }
 0x3ac   :  { %v434_v22 = vpop.xlane.xlu0 %433 }
 0x3ad   :  { %v438_v23 = vsub.f32 %v427_v58, %v434_v22  ;;  %v523_v22 = vld [vmem:[#allocation2 + $0x60] sm:$0xff] }
 0x3ae   :  { %544 = vmatpush.msrb.mxu1 %v523_v22 }
 0x3af   :  { %v1667_v24 = vpop.eup %1666  ;;  %v440_v25 = vmul.f32 1.442695, %v438_v23  ;;  %v522_v23 = vld [vmem:[#allocation2 + $0x58] sm:$0xff] }
 0x3b0   :  { %v255_v26 = vsel %vm143_vm4, %v1667_v24, 0.0  ;;  %545 = vmatpush.msrb.mxu1 %v522_v23  ;;  %v661_v23 = vld [vmem:[#allocation2 + $0xe8] sm:$0xff] }
 0x3b1   :  { %1668 = vpow2.f32 %v440_v25  ;;  %256 = vadd.xlane.f32.xlu0 %v255_v26  ;;  %v520_v25 = vld [vmem:[#allocation2 + $0x48] sm:$0xff] }
 0x3b7   :  { %v1669_v27 = vpop.eup %1668 }
 0x3b8   :  { %v444_v29 = vsel %vm143_vm4, %v1669_v27, 0.0 }
 0x3b9   :  { %445 = vadd.xlane.f32.xlu0 %v444_v29 }
 0x3bb   :  { %1603 = vrot.lane.b32.xlu2 %v1849_v17, %s1803_s26 }
 0x3c3   :  { %1613 = vrot.lane.b32.xlu2 %v1849_v17, %s1804_s27 }
 0x40e   :  { %v338_v30 = vpop.xlane.xlu2 %337 }
 0x40f   :  { %v342_v31 = vsub.f32 %v331_v0, %v338_v30 }
 0x411   :  { %v344_v32 = vmul.f32 1.442695, %v342_v31 }
 0x413   :  { %1670 = vpow2.f32 %v344_v32 }
 0x416   :  { %v341_v33 = vpop.xlane.xlu1 %340  ;;  %v437_v34 = vpop.xlane.xlu2 %436 }
 0x417   :  { %v343_v35 = vsub.f32 %v334_v10, %v341_v33  ;;  %v439_v38 = vsub.f32 %v430_v6, %v437_v34 }
 0x419   :  { %v1671_v36 = vpop.eup %1670  ;;  %v346_v37 = vmul.f32 1.442695, %v343_v35  ;;  %v442_v41 = vmul.f32 1.442695, %v439_v38 }
 0x41a   :  { %v348_v39 = vsel %vm143_vm4, %v1671_v36, 0.0 }
 0x41b   :  { %1672 = vpow2.f32 %v346_v37  ;;  %349 = vadd.xlane.f32.xlu1 %v348_v39 }
 0x41c   :  { %v254_v40 = vpop.xlane.xlu0 %253 }
 0x41d   :  { %1674 = vrcp.f32 %v254_v40 }
 0x41e   :  { %v161_v42 = vpop.xlane.xlu1 %160  ;;  %v1604_v44 = vpop.permute.xlu2 %1603 }
 0x41f   :  { %1676 = vrcp.f32 %v161_v42  ;;  %v1605_v45 = vunpack.i.l.bf16 %v1604_v44  ;;  %v1606_v47 = vunpack.i.h.bf16 %v1604_v44 }
 0x420   :  { %1678 = vpow2.f32 %v442_v41 }
 0x421   :  { %v1673_v46 = vpop.eup %1672  ;;  %288 = vmatpush.msra.mxu3 %v1605_v45 }
 0x422   :  { %v351_v48 = vsel %vm143_vm4, %v1673_v46, 0.0 }
 0x423   :  { %v1675_v49 = vpop.eup %1674  ;;  %352 = vadd.xlane.f32.xlu0 %v351_v48  ;;  %289 = vmatpush.msra.mxu3 %v1606_v47  ;;  %v1808_v48 = vmov 32.0  }
 0x424   :  { %v257_v50 = vpop.xlane.xlu0 %256  ;;  %v260_v51 = vmul.f32 %v1675_v49, %v1665_v18 }
 0x425   :  { %v1677_v52 = vpop.eup %1676  ;;  %1680 = vrcp.f32 %v257_v50 }
 0x426   :  { %v1614_v53 = vpop.permute.xlu2 %1613  ;;  %1527 = vmatmul.msk.f32.vlgmr.msra.gmra.mxu3 %vm143_vm4, %v260_v51  ;;  %v165_v54 = vmul.f32 %v1677_v52, %v1663_v16  ;;  %v1679_v55 = vpop.eup %1678 }
 0x427   :  { %v1615_v56 = vunpack.i.l.bf16 %v1614_v53  ;;  %v1616_v57 = vunpack.i.h.bf16 %v1614_v53  ;;  %v447_v58 = vsel %vm143_vm4, %v1679_v55, 0.0 }
 0x428   :  { %1522 = vmatmul.msk.f32.vlgmr.msrb.gmra.mxu2 %vm143_vm4, %v165_v54 }
 0x429   :  { %480 = vmatpush.msrb.mxu3 %v1615_v56 }
 0x42b   :  { %v1681_v59 = vpop.eup %1680  ;;  %448 = vadd.xlane.f32.xlu0 %v447_v58  ;;  %481 = vmatpush.msrb.mxu3 %v1616_v57 }
 0x42c   :  { %v446_v61 = vpop.xlane.xlu0 %445  ;;  %v261_v62 = vmul.f32 %v1681_v59, %v1667_v24  ;;  %v521_v24 = vld [vmem:[#allocation2 + $0x50] sm:$0xff] }
 0x42d   :  { %1682 = vrcp.f32 %v446_v61  ;;  %546 = vmatpush.msrb.mxu1 %v521_v24 }
 0x42e   :  { %1528 = vmatmul.msk.f32.gmra.mxu3 %vm143_vm4, %v261_v62 }
 0x42f   :  { %547 = vmatpush.msrb.mxu1 %v520_v25 }
 0x433   :  { %v1683_v63 = vpop.eup %1682 }
 0x434   :  { %1608 = vrot.lane.b32.xlu1 %v1849_v17, %s1805_s28  ;;  %v452_v0 = vmul.f32 %v1683_v63, %v1669_v27 }
 0x436   :  { %1539 = vmatmul.msk.f32.vlgmr.msrb.gmra.mxu3 %vm143_vm4, %v452_v0  ;;  %v619_v0 = vld [vmem:[#allocation2 + $0x98] sm:$0xff] }
 0x48e   :  { %v350_v2 = vpop.xlane.xlu1 %349 }
 0x496   :  { %v353_v1 = vpop.xlane.xlu0 %352 }
 0x49e   :  { %v449_v3 = vpop.xlane.xlu0 %448 }
 0x49f   :  { %1684 = vrcp.f32 %v449_v3  ;;  %v616_v3 = vld [vmem:[#allocation2 + $0x80] sm:$0xff] }
 0x4a0   :  { %1686 = vrcp.f32 %v350_v2  ;;  %v617_v2 = vld [vmem:[#allocation2 + $0x88] sm:$0xff] }
 0x4a1   :  { %1688 = vrcp.f32 %v353_v1  ;;  %v618_v1 = vld [vmem:[#allocation2 + $0x90] sm:$0xff] }
 0x4a2   :  { %1690 = vrcp.f32 %v1808_v48  ;;  %v655_v48 = vld [vmem:[#allocation2 + $0xb8] sm:$0xff] }
 0x4a5   :  { %v1685_v4 = vpop.eup %1684 }
 0x4a6   :  { %v1609_v5 = vpop.permute.xlu1 %1608  ;;  %v453_v6 = vmul.f32 %v1685_v4, %v1679_v55  ;;  %v1687_v7 = vpop.eup %1686 }
 0x4a7   :  { %v1610_v8 = vunpack.i.l.bf16 %v1609_v5  ;;  %v1611_v10 = vunpack.i.h.bf16 %v1609_v5  ;;  %v356_v17 = vmul.f32 %v1687_v7, %v1671_v36  ;;  %v1689_v13 = vpop.eup %1688  ;;  %v668_v7 = vld [vmem:[#allocation2 + $0x120] sm:$0xff] }
 0x4a8   :  { %1540 = vmatmul.msk.f32.gmra.mxu3 %vm143_vm4, %v453_v6  ;;  %v357_v15 = vmul.f32 %v1689_v13, %v1673_v46  ;;  %v1691_v49 = vpop.eup %1690  ;;  %671 = vmatpush.msrb.mxu0 %v668_v7  ;;  %v665_v13 = vld [vmem:[#allocation2 + $0x108] sm:$0xff] }
 0x4a9   :  { %v291_v12 = vpop.f32.mrf.mxu3  ;;  %384 = vmatpush.msra.mxu2 %v1610_v8  ;;  %v566_v50 = vmul.f32 32.0, %v1691_v49  ;;  %vm570_vm6 = vweird.f32 %v1691_v49  ;;  %v667_v8 = vld [vmem:[#allocation2 + $0x118] sm:$0xff] }
 0x4aa   :  { %491 = vrot.lane.b32.xlu2 %v291_v12, %s1794_s15  ;;  %672 = vmatpush.msrb.mxu0 %v667_v8 }
 0x4ab   :  { %385 = vmatpush.msra.mxu2 %v1611_v10  ;;  %v198_v18 = vpop.f32.mrf.mxu2  ;;  %v567_v51 = vsub.f32 1.0, %v566_v50  ;;  %v666_v10 = vld [vmem:[#allocation2 + $0x110] sm:$0xff]  ;;  %v653_v50 = vld [vmem:[#allocation2 + $0xa8] sm:$0xff] }
 0x4ac   :  { %1533 = vmatmul.msk.f32.vlgmr.msra.gmra.mxu2 %vm143_vm4, %v356_v17  ;;  %673 = vmatpush.msrb.mxu0 %v666_v10 }
 0x4ad   :  { %v568_v52 = vmul.f32 %v1691_v49, %v567_v51  ;;  %640 = vmatpush.msrb.mxu2 %v619_v0  ;;  %v1642_v51 = vld [vmem:[#allocation2 + $0xa0] ss:$0 sm:$0xff] }
 0x4ae   :  { %674 = vmatpush.msrb.mxu0 %v665_v13 }
 0x4af   :  { %v569_v53 = vadd.f32 %v1691_v49, %v568_v52  ;;  %641 = vmatpush.msrb.mxu2 %v618_v1 }
 0x4b1   :  { %v294_v14 = vpop.f32.mrf.mxu3  ;;  %v1940_v54 = vsel %vm570_vm6, %v1691_v49, %v569_v53  ;;  %642 = vmatpush.msrb.mxu2 %v617_v2  ;;  %v654_v49 = vld [vmem:[#allocation2 + $0xb0] sm:$0xff] }
 0x4b2   :  { %493 = vrot.lane.b32.xlu2 %v294_v14, %s1794_s15 }
 0x4b3   :  { %643 = vmatpush.msrb.mxu2 %v616_v3 }
 0x4b4   :  { %1534 = vmatmul.msk.f32.gmra.mxu2 %vm143_vm4, %v357_v15 }
 0x4b9   :  { %v483_v16 = vpop.f32.mrf.mxu3 }
 0x4ba   :  { %507 = vrot.lane.b32.xlu1 %v483_v16, %s1806_s29  ;;  %v664_v16 = vld [vmem:[#allocation2 + $0x100] sm:$0xff] }
 0x4bb   :  { %675 = vmatpush.msrb.mxu0 %v664_v16  ;;  %v749_v16 = vld [vmem:[#allocation2 + $0x148] sm:$0xff] }
 0x504   :  { %v492_v26 = vpop.permute.xlu2 %491 }
 0x505   :  { %v513_v27 = vsel %vm111_vm3, %v1893_v60, %v492_v26  ;;  %v1639_v60 = vld [vmem:[#allocation2 + $0x68] ss:$0 sm:$0xff]  ;;  %v660_v26 = vld [vmem:[#allocation2 + $0xe0] sm:$0xff] }
 0x50c   :  { %v494_v31 = vpop.permute.xlu2 %493 }
 0x50d   :  { %v514_v34 = vsel %vm111_vm3, %v198_v18, %v494_v31  ;;  %v659_v31 = vld [vmem:[#allocation2 + $0xd8] sm:$0xff] }
 0x52b   :  { %v486_v19 = vpop.f32.mrf.mxu3 }
 0x52c   :  { %509 = vrot.lane.b32.xlu2 %v486_v19, %s1806_s29  ;;  %v508_v29 = vpop.permute.xlu1 %507  ;;  %v663_v19 = vld [vmem:[#allocation2 + $0xf8] sm:$0xff] }
 0x52d   :  { %676 = vmatpush.msrb.mxu0 %v663_v19 }
 0x52f   :  { %v387_v20 = vpop.f32.mrf.mxu2 }
 0x530   :  { %499 = vrot.lane.b32.xlu0 %v387_v20, %s1807_s30 }
 0x537   :  { %v390_v21 = vpop.f32.mrf.mxu2 }
 0x538   :  { %501 = vrot.lane.b32.xlu1 %v390_v21, %s1807_s30  ;;  %v662_v21 = vld [vmem:[#allocation2 + $0xf0] sm:$0xff] }
 0x539   :  { %677 = vmatpush.msrb.mxu0 %v662_v21 }
 0x53b   :  { %678 = vmatpush.msrb.mxu0 %v661_v23 }
 0x53d   :  { %679 = vmatpush.msrb.mxu0 %v660_v26 }
 0x53f   :  { %680 = vmatpush.msrb.mxu0 %v659_v31 }
 0x586   :  { %v510_v36 = vpop.permute.xlu2 %509 }
 0x5a2   :  { %v500_v30 = vpop.permute.xlu0 %499 }
 0x5a3   :  { %v515_v32 = vsel %vm143_vm4, %v513_v27, %v500_v30  ;;  %v1640_v30 = vld [vmem:[#allocation2 + $0x70] ss:$0 sm:$0xff] }
 0x5a4   :  { %v518_v33 = vsel %vm517_vm5, %v515_v32, %v508_v29 }
 0x5a5   :  { %1541 = vmatmul.msk.f32.vlgmr.msrb.gmra.mxu1 %vm75_vm2, %v518_v33 }
 0x5aa   :  { %v502_v35 = vpop.permute.xlu1 %501 }
 0x5ab   :  { %v516_v37 = vsel %vm143_vm4, %v514_v34, %v502_v35  ;;  %v1641_v35 = vld [vmem:[#allocation2 + $0x78] ss:$0 sm:$0xff] }
 0x5ac   :  { %v519_v38 = vsel %vm517_vm5, %v516_v37, %v510_v36  ;;  %v658_v36 = vld [vmem:[#allocation2 + $0xd0] sm:$0xff] }
 0x5ad   :  { %1542 = vmatmul.msk.f32.gmra.mxu1 %vm75_vm2, %v519_v38  ;;  %681 = vmatpush.msrb.mxu0 %v658_v36 }
 0x622   :  { %v549_v39 = vpop.f32.mrf.mxu1 }
 0x623   :  { %v550_v40 = vadd.f32 %v1639_v60, %v549_v39 }
 0x625   :  { %v555_v41 = vadd.f32 %v550_v40, %v1835_v9 }
 0x627   :  { %v559_v42 = vsel %vm75_vm2, %v555_v41, 0.0 }
 0x628   :  { %560 = vadd.xlane.f32.xlu1 %v559_v42 }
 0x62a   :  { %v552_v44 = vpop.f32.mrf.mxu1 }
 0x62b   :  { %v553_v45 = vadd.f32 %v1639_v60, %v552_v44  ;;  %v657_v60 = vld [vmem:[#allocation2 + $0xc8] sm:$0xff] }
 0x62c   :  { %682 = vmatpush.msrb.mxu0 %v657_v60 }
 0x62d   :  { %v556_v46 = vadd.f32 %v553_v45, %v1839_v11 }
 0x62f   :  { %v562_v47 = vsel %vm75_vm2, %v556_v46, 0.0 }
 0x630   :  { %563 = vadd.xlane.f32.xlu0 %v562_v47 }
 0x69b   :  { %v561_v9 = vpop.xlane.xlu1 %560 }
 0x69c   :  { %v572_v55 = vmul.f32 %v1940_v54, %v561_v9 }
 0x69e   :  { %v574_v56 = vsub.f32 %v555_v41, %v572_v55  ;;  %v656_v41 = vld [vmem:[#allocation2 + $0xc0] sm:$0xff] }
 0x69f   :  { %683 = vmatpush.msrb.mxu0 %v656_v41 }
 0x6a0   :  { %v576_v57 = vmul.f32 %v574_v56, %v574_v56 }
 0x6a1   :  { %684 = vmatpush.msrb.mxu0 %v655_v48  ;;  %v1646_v48 = vld [vmem:[#allocation2 + $0x160] ss:$0 sm:$0xff] }
 0x6a2   :  { %v578_v11 = vsel %vm75_vm2, %v576_v57, 0.0 }
 0x6a3   :  { %579 = vadd.xlane.f32.xlu2 %v578_v11  ;;  %v564_v58 = vpop.xlane.xlu0 %563  ;;  %685 = vmatpush.msrb.mxu0 %v654_v49  ;;  %v1643_v11 = vld [vmem:[#allocation2 + $0x128] ss:$0 sm:$0xff] }
 0x6a4   :  { %v573_v59 = vmul.f32 %v1940_v54, %v564_v58 }
 0x6a5   :  { %686 = vmatpush.msrb.mxu0 %v653_v50 }
 0x6a6   :  { %v1945_v61 = vsub.f32 %v556_v46, %v573_v59 }
 0x6a8   :  { %v577_v62 = vmul.f32 %v1945_v61, %v1945_v61 }
 0x6aa   :  { %v581_v63 = vsel %vm75_vm2, %v577_v62, 0.0 }
 0x6ab   :  { %582 = vadd.xlane.f32.xlu1 %v581_v63 }
 0x716   :  { %v580_v4 = vpop.xlane.xlu2 %579 }
 0x717   :  { %v584_v5 = vmul.f32 %v580_v4, %v1940_v54 }
 0x719   :  { %v586_v6 = vadd.f32 1e-05, %v584_v5 }
 0x71b   :  { %1692 = vrsqrt.f32 %v586_v6  ;;  %vm594_vm8 = vweird.f32 %v586_v6 }
 0x71e   :  { %v583_v12 = vpop.xlane.xlu1 %582 }
 0x71f   :  { %v585_v17 = vmul.f32 %v583_v12, %v1940_v54 }
 0x721   :  { %v1693_v14 = vpop.eup %1692  ;;  %v587_v15 = vadd.f32 1e-05, %v585_v17 }
 0x722   :  { %v589_v18 = vmul.f32 %v1693_v14, %v586_v6  ;;  %vm595_vm7 = vweird.f32 %v1693_v14 }
 0x723   :  { %1694 = vrsqrt.f32 %v587_v15  ;;  %vm596_vm9 = vmor %vm594_vm8, %vm595_vm7  ;;  %vm604_vm11 = vweird.f32 %v587_v15 }
 0x724   :  { %v590_v20 = vmul.f32 %v1693_v14, %v589_v18  ;;  %v748_v18 = vld [vmem:[#allocation2 + $0x140] sm:$0xff] }
 0x726   :  { %v591_v22 = vmul.f32 0.5, %v590_v20 }
 0x728   :  { %v592_v24 = vsub.f32 1.5, %v591_v22 }
 0x729   :  { %v1695_v25 = vpop.eup %1694 }
 0x72a   :  { %v593_v27 = vmul.f32 %v1693_v14, %v592_v24  ;;  %v599_v29 = vmul.f32 %v1695_v25, %v587_v15  ;;  %vm605_vm10 = vweird.f32 %v1695_v25  ;;  %v750_v15 = vld [vmem:[#allocation2 + $0x150] sm:$0xff] }
 0x72b   :  { %vm606_vm12 = vmor %vm604_vm11, %vm605_vm10 }
 0x72c   :  { %v597_v32 = vsel %vm596_vm9, %v1693_v14, %v593_v27  ;;  %v600_v33 = vmul.f32 %v1695_v25, %v599_v29  ;;  %v751_v14 = vld [vmem:[#allocation2 + $0x158] sm:$0xff] }
 0x72d   :  { %v608_v34 = vmul.f32 %v597_v32, %v574_v56  ;;  %772 = vmatpush.msra.mxu3 %v751_v14 }
 0x72e   :  { %v601_v37 = vmul.f32 0.5, %v600_v33 }
 0x72f   :  { %v611_v38 = vmul.f32 %v1640_v30, %v608_v34  ;;  %773 = vmatpush.msra.mxu3 %v750_v15  ;;  %v1644_v34 = vld [vmem:[#allocation2 + $0x130] ss:$0 sm:$0xff] }
 0x730   :  { %v602_v39 = vsub.f32 1.5, %v601_v37 }
 0x731   :  { %v614_v40 = vadd.f32 %v1641_v35, %v611_v38  ;;  %774 = vmatpush.msra.mxu3 %v749_v16  ;;  %v1645_v38 = vld [vmem:[#allocation2 + $0x138] ss:$0 sm:$0xff] }
 0x732   :  { %v603_v42 = vmul.f32 %v1695_v25, %v602_v39 }
 0x733   :  { %1543 = vmatmul.msk.f32.vlgmr.msrb.gmra.mxu2 %vm75_vm2, %v614_v40  ;;  %775 = vmatpush.msra.mxu3 %v748_v18 }
 0x734   :  { %v607_v44 = vsel %vm606_vm12, %v1695_v25, %v603_v42 }
 0x735   :  { %v609_v45 = vmul.f32 %v607_v44, %v1945_v61 }
 0x737   :  { %v612_v46 = vmul.f32 %v1640_v30, %v609_v45 }
 0x739   :  { %v615_v47 = vadd.f32 %v1641_v35, %v612_v46 }
 0x73b   :  { %1544 = vmatmul.msk.f32.gmra.mxu2 %vm75_vm2, %v615_v47 }
 0x7b6   :  { %v645_v52 = vpop.f32.mrf.mxu2 }
 0x7b7   :  { %v646_v53 = vadd.f32 %v1642_v51, %v645_v52 }
 0x7b9   :  { %v651_v9 = vmax.f32 %v646_v53, 0.0 }
 0x7bb   :  { %687 = vmatmul.f32.vlgmr.msrb.gmra.mxu0 %v651_v9 }
 0x7be   :  { %v648_v55 = vpop.f32.mrf.mxu2 }
 0x7bf   :  { %v649_v56 = vadd.f32 %v1642_v51, %v648_v55 }
 0x7c1   :  { %v652_v57 = vmax.f32 %v649_v56, 0.0 }
 0x7c3   :  { %690 = vmatmul.f32.gmra.mxu0 %v652_v57 }
 0x838   :  { %v688_v58 = vpop.f32.mrf.mxu0 }
 0x839   :  { %v689_v59 = vadd.f32 %v1643_v11, %v688_v58 }
 0x83b   :  { %v694_v61 = vadd.f32 %v689_v59, %v614_v40 }
 0x83d   :  { %v698_v62 = vsel %vm75_vm2, %v694_v61, 0.0 }
 0x83e   :  { %699 = vadd.xlane.f32.xlu0 %v698_v62 }
 0x840   :  { %v691_v63 = vpop.f32.mrf.mxu0 }
 0x841   :  { %v692_v0 = vadd.f32 %v1643_v11, %v691_v63 }
 0x843   :  { %v695_v1 = vadd.f32 %v692_v0, %v615_v47 }
 0x845   :  { %v701_v2 = vsel %vm75_vm2, %v695_v1, 0.0 }
 0x846   :  { %702 = vadd.xlane.f32.xlu2 %v701_v2 }
 0x8b1   :  { %v700_v3 = vpop.xlane.xlu0 %699 }
 0x8b2   :  { %v704_v4 = vmul.f32 %v700_v3, %v1940_v54 }
 0x8b4   :  { %v706_v5 = vsub.f32 %v694_v61, %v704_v4 }
 0x8b6   :  { %v708_v6 = vmul.f32 %v706_v5, %v706_v5 }
 0x8b8   :  { %v710_v7 = vsel %vm75_vm2, %v708_v6, 0.0 }
 0x8b9   :  { %v703_v8 = vpop.xlane.xlu2 %702  ;;  %711 = vadd.xlane.f32.xlu1 %v710_v7 }
 0x8ba   :  { %v705_v10 = vmul.f32 %v703_v8, %v1940_v54 }
 0x8bc   :  { %v707_v12 = vsub.f32 %v695_v1, %v705_v10 }
 0x8be   :  { %v709_v17 = vmul.f32 %v707_v12, %v707_v12 }
 0x8c0   :  { %v713_v13 = vsel %vm75_vm2, %v709_v17, 0.0 }
 0x8c1   :  { %714 = vadd.xlane.f32.xlu0 %v713_v13 }
 0x92c   :  { %v712_v19 = vpop.xlane.xlu1 %711 }
 0x92d   :  { %v716_v20 = vmul.f32 %v712_v19, %v1940_v54 }
 0x92f   :  { %v718_v21 = vadd.f32 1e-05, %v716_v20 }
 0x931   :  { %1696 = vrsqrt.f32 %v718_v21  ;;  %vm726_vm14 = vweird.f32 %v718_v21 }
 0x934   :  { %v715_v22 = vpop.xlane.xlu0 %714 }
 0x935   :  { %v717_v23 = vmul.f32 %v715_v22, %v1940_v54 }
 0x937   :  { %v1697_v24 = vpop.eup %1696  ;;  %v719_v25 = vadd.f32 1e-05, %v717_v23 }
 0x938   :  { %v721_v26 = vmul.f32 %v1697_v24, %v718_v21  ;;  %vm727_vm13 = vweird.f32 %v1697_v24 }
 0x939   :  { %1698 = vrsqrt.f32 %v719_v25  ;;  %vm728_vm15 = vmor %vm726_vm14, %vm727_vm13  ;;  %vm736_vm1 = vweird.f32 %v719_v25 }
 0x93a   :  { %v722_v27 = vmul.f32 %v1697_v24, %v721_v26 }
 0x93c   :  { %v723_v29 = vmul.f32 0.5, %v722_v27 }
 0x93e   :  { %v724_v30 = vsub.f32 1.5, %v723_v29 }
 0x93f   :  { %v1699_v31 = vpop.eup %1698 }
 0x940   :  { %v725_v32 = vmul.f32 %v1697_v24, %v724_v30  ;;  %v731_v33 = vmul.f32 %v1699_v31, %v719_v25  ;;  %vm737_vm0 = vweird.f32 %v1699_v31 }
 0x941   :  { %vm738_vm6 = vmor %vm736_vm1, %vm737_vm0  ;;  %vm1422_vm0 = vcmask 1040384   ;;  %vm1464_vm1 = vcmask 523264  }
 0x942   :  { %v729_v35 = vsel %vm728_vm15, %v1697_v24, %v725_v32  ;;  %v732_v36 = vmul.f32 %v1699_v31, %v731_v33 }
 0x943   :  { %v740_v37 = vmul.f32 %v729_v35, %v706_v5 }
 0x944   :  { %v733_v60 = vmul.f32 0.5, %v732_v36 }
 0x945   :  { %v743_v39 = vmul.f32 %v1644_v34, %v740_v37 }
 0x946   :  { %v734_v40 = vsub.f32 1.5, %v733_v60 }
 0x947   :  { %v1963_v41 = vadd.f32 %v1645_v38, %v743_v39 }
 0x948   :  { %v735_v42 = vmul.f32 %v1699_v31, %v734_v40 }
 0x949   :  { %1545 = vmatmul.msk.f32.vlgmr.msra.gmra.mxu3 %vm75_vm2, %v1963_v41 }
 0x94a   :  { %v739_v44 = vsel %vm738_vm6, %v1699_v31, %v735_v42 }
 0x94b   :  { %v741_v45 = vmul.f32 %v739_v44, %v707_v12 }
 0x94d   :  { %v744_v46 = vmul.f32 %v1644_v34, %v741_v45 }
 0x94f   :  { %v1967_v47 = vadd.f32 %v1645_v38, %v744_v46 }
 0x951   :  { %1546 = vmatmul.msk.f32.gmra.mxu3 %vm75_vm2, %v1967_v47 }
 0x9cc   :  { %v777_v49 = vpop.f32.mrf.mxu3 }
 0x9cd   :  { %v1971_v50 = vadd.f32 %v1646_v48, %v777_v49 }
 0x9cf   :  { %785 = vrot.lane.b32.xlu1 %v1971_v50, %s1796_s19 }
 0x9d4   :  { %v780_v51 = vpop.f32.mrf.mxu3 }
 0x9d5   :  { %v781_v52 = vadd.f32 %v1646_v48, %v780_v51 }
 0x9d7   :  { %787 = vrot.lane.b32.xlu2 %v781_v52, %s1796_s19  ;;  %v1977_v53 = vpack.i.bf16 %v1971_v50, %v781_v52 }
 0x9d9   :  { %1618 = vrot.lane.b32.xlu1 %v1977_v53, %s1800_s23 }
 0x9df   :  { %881 = vrot.lane.b32.xlu2 %v1971_v50, %s1795_s0 }
 0x9e1   :  { %877 = vrot.lane.b32.xlu1 %v1971_v50, %s1799_s22 }
 0x9e7   :  { %883 = vrot.lane.b32.xlu2 %v781_v52, %s1795_s0 }
 0x9e9   :  { %1075 = vrot.lane.b32.xlu1 %v781_v52, %s1798_s21 }
 0x9ef   :  { %979 = vrot.lane.b32.xlu2 %v781_v52, %s1797_s20 }
 0x9f1   :  { %1073 = vrot.lane.b32.xlu1 %v1971_v50, %s1798_s21 }
 0x9f7   :  { %977 = vrot.lane.b32.xlu2 %v1971_v50, %s1797_s20 }
 0x9f9   :  { %975 = vrot.lane.b32.xlu1 %v781_v52, %s1802_s25 }
 0x9ff   :  { %973 = vrot.lane.b32.xlu2 %v1971_v50, %s1802_s25 }
 0xa07   :  { %1071 = vrot.lane.b32.xlu2 %v781_v52, %s1801_s24 }
 0xa31   :  { %v788_v9 = vpop.permute.xlu2 %787 }
 0xa32   :  { %1547 = vmatpush.xpose.msk.msra.mxu1 %vm111_vm3, %v788_v9 }
 0xa39   :  { %v882_v55 = vpop.permute.xlu2 %881 }
 0xa41   :  { %v786_v56 = vpop.permute.xlu1 %785  ;;  %v884_v57 = vpop.permute.xlu2 %883 }
 0xa42   :  { %1548 = vmatpush.xpose.msk.msra.mxu1 %vm111_vm3, %v786_v56  ;;  %1553 = vmatpush.xpose.msk.msrb.mxu3 %vm111_vm3, %v884_v57 }
 0xa45   :  { %1549 = vmatmul.msk.f32.vlgmr.msra.gmra.mxu1 %vm111_vm3, %v1971_v50 }
 0xa46   :  { %1554 = vmatpush.xpose.msk.msrb.mxu3 %vm111_vm3, %v882_v55 }
 0xa49   :  { %v980_v11 = vpop.permute.xlu2 %979 }
 0xa4b   :  { %v1619_v58 = vpop.permute.xlu1 %1618 }
 0xa4c   :  { %v1620_v59 = vunpack.i.l.bf16 %v1619_v58  ;;  %v1621_v61 = vunpack.i.h.bf16 %v1619_v58 }
 0xa4d   :  { %1550 = vmatmul.msk.f32.gmra.mxu1 %vm111_vm3, %v781_v52 }
 0xa4e   :  { %868 = vmatpush.msra.mxu2 %v1620_v59 }
 0xa50   :  { %869 = vmatpush.msra.mxu2 %v1621_v61 }
 0xa51   :  { %v978_v63 = vpop.permute.xlu2 %977 }
 0xa52   :  { %1559 = vmatpush.xpose.msk.msrb.mxu2 %vm111_vm3, %v980_v11 }
 0xa53   :  { %v878_v62 = vpop.permute.xlu1 %877 }
 0xa54   :  { %1555 = vmatmul.msk.f32.vlgmr.msrb.gmra.mxu3 %vm111_vm3, %v878_v62 }
 0xa56   :  { %1560 = vmatpush.xpose.msk.msrb.mxu2 %vm111_vm3, %v978_v63 }
 0xa59   :  { %v974_v31 = vpop.permute.xlu2 %973 }
 0xa5b   :  { %v1076_v0 = vpop.permute.xlu1 %1075 }
 0xa5c   :  { %1565 = vmatpush.xpose.msk.msra.mxu3 %vm111_vm3, %v1076_v0 }
 0xa61   :  { %v1072_v37 = vpop.permute.xlu2 %1071 }
 0xa63   :  { %v1074_v1 = vpop.permute.xlu1 %1073 }
 0xa64   :  { %1566 = vmatpush.xpose.msk.msra.mxu3 %vm111_vm3, %v1074_v1 }
 0xa6b   :  { %v976_v35 = vpop.permute.xlu1 %975 }
 0xac2   :  { %v814_v2 = vpop.f32.mrf.mxu1 }
 0xac3   :  { %v815_v3 = vadd.f32 %v814_v2, %v1862_v28 }
 0xac5   :  { %v820_v4 = vsel %vm143_vm4, %v815_v3, -inf }
 0xac6   :  { %821 = vmax.xlane.f32.xlu0 %v820_v4 }
 0xaca   :  { %v817_v5 = vpop.f32.mrf.mxu1 }
 0xacb   :  { %v818_v6 = vadd.f32 %v817_v5, %v1880_v43 }
 0xacd   :  { %v823_v7 = vsel %vm143_vm4, %v818_v6, -inf }
 0xace   :  { %824 = vmax.xlane.f32.xlu0 %v823_v7 }
 0xad7   :  { %v910_v21 = vpop.f32.mrf.mxu3 }
 0xad8   :  { %v911_v22 = vadd.f32 %v910_v21, %v1862_v28 }
 0xada   :  { %v916_v23 = vsel %vm143_vm4, %v911_v22, -inf }
 0xae2   :  { %879 = vrot.lane.b32.xlu0 %v781_v52, %s1799_s22 }
 0xb39   :  { %v822_v8 = vpop.xlane.xlu0 %821 }
 0xb3a   :  { %v826_v10 = vsub.f32 %v815_v3, %v822_v8 }
 0xb3c   :  { %v828_v12 = vmul.f32 1.442695, %v826_v10 }
 0xb3e   :  { %1700 = vpow2.f32 %v828_v12 }
 0xb41   :  { %v825_v17 = vpop.xlane.xlu0 %824 }
 0xb42   :  { %v827_v13 = vsub.f32 %v818_v6, %v825_v17 }
 0xb44   :  { %v1701_v14 = vpop.eup %1700  ;;  %v830_v15 = vmul.f32 1.442695, %v827_v13 }
 0xb45   :  { %v832_v16 = vsel %vm143_vm4, %v1701_v14, 0.0 }
 0xb46   :  { %1702 = vpow2.f32 %v830_v15  ;;  %833 = vadd.xlane.f32.xlu0 %v832_v16 }
 0xb4c   :  { %v1703_v18 = vpop.eup %1702 }
 0xb4d   :  { %v835_v19 = vsel %vm143_vm4, %v1703_v18, 0.0 }
 0xb4e   :  { %836 = vadd.xlane.f32.xlu0 %v835_v19 }
 0xb54   :  { %v880_v20 = vpop.permute.xlu0 %879 }
 0xb55   :  { %1556 = vmatmul.msk.f32.gmra.mxu3 %vm111_vm3, %v880_v20 }
 0xb62   :  { %1069 = vrot.lane.b32.xlu0 %v1971_v50, %s1801_s24 }
 0xb8c   :  { %917 = vmax.xlane.f32.xlu0 %v916_v23 }
 0xbb9   :  { %v834_v24 = vpop.xlane.xlu0 %833 }
 0xbba   :  { %1704 = vrcp.f32 %v834_v24 }
 0xbc0   :  { %v1705_v25 = vpop.eup %1704 }
 0xbc1   :  { %v840_v26 = vmul.f32 %v1705_v25, %v1701_v14  ;;  %v837_v27 = vpop.xlane.xlu0 %836 }
 0xbc2   :  { %1706 = vrcp.f32 %v837_v27 }
 0xbc3   :  { %1551 = vmatmul.msk.f32.vlgmr.msra.gmra.mxu2 %vm143_vm4, %v840_v26 }
 0xbc8   :  { %v1707_v29 = vpop.eup %1706 }
 0xbc9   :  { %v841_v30 = vmul.f32 %v1707_v29, %v1703_v18 }
 0xbcb   :  { %1552 = vmatmul.msk.f32.gmra.mxu2 %vm143_vm4, %v841_v30 }
 0xbd3   :  { %1561 = vmatmul.msk.f32.vlgmr.msrb.gmra.mxu2 %vm111_vm3, %v974_v31 }
 0xbd4   :  { %v1070_v32 = vpop.permute.xlu0 %1069 }
 0xbd5   :  { %1567 = vmatmul.msk.f32.vlgmr.msra.gmra.mxu3 %vm111_vm3, %v1070_v32 }
 0xbd8   :  { %v913_v33 = vpop.f32.mrf.mxu3 }
 0xbd9   :  { %v914_v34 = vadd.f32 %v913_v33, %v1880_v43 }
 0xbdb   :  { %1562 = vmatmul.msk.f32.gmra.mxu2 %vm111_vm3, %v976_v35  ;;  %v919_v36 = vsel %vm143_vm4, %v914_v34, -inf }
 0xbdc   :  { %920 = vmax.xlane.f32.xlu1 %v919_v36 }
 0xbdd   :  { %1568 = vmatmul.msk.f32.gmra.mxu3 %vm111_vm3, %v1072_v37 }
 0xbff   :  { %v918_v39 = vpop.xlane.xlu0 %917 }
 0xc00   :  { %v922_v40 = vsub.f32 %v911_v22, %v918_v39 }
 0xc02   :  { %v924_v42 = vmul.f32 1.442695, %v922_v40 }
 0xc04   :  { %1708 = vpow2.f32 %v924_v42 }
 0xc0a   :  { %v1709_v57 = vpop.eup %1708 }
 0xc46   :  { %v2028_v38 = vpop.f32.mrf.mxu2 }
 0xc4e   :  { %v2030_v60 = vpop.f32.mrf.mxu2 }
 0xc4f   :  { %v921_v45 = vpop.xlane.xlu1 %920 }
 0xc50   :  { %v923_v51 = vsub.f32 %v914_v34, %v921_v45 }
 0xc52   :  { %v926_v9 = vmul.f32 1.442695, %v923_v51 }
 0xc54   :  { %1710 = vpow2.f32 %v926_v9 }
 0xc56   :  { %v1006_v44 = vpop.f32.mrf.mxu2 }
 0xc57   :  { %v1007_v46 = vadd.f32 %v1006_v44, %v1862_v28 }
 0xc58   :  { %v1102_v48 = vpop.f32.mrf.mxu3 }
 0xc59   :  { %v1103_v49 = vadd.f32 %v1102_v48, %v1862_v28  ;;  %v1012_v50 = vsel %vm143_vm4, %v1007_v46, -inf  ;;  %v928_v28 = vsel %vm143_vm4, %v1709_v57, 0.0 }
 0xc5a   :  { %1013 = vmax.xlane.f32.xlu2 %v1012_v50  ;;  %v1711_v62 = vpop.eup %1710 }
 0xc5b   :  { %v1108_v52 = vsel %vm143_vm4, %v1103_v49, -inf  ;;  %v931_v63 = vsel %vm143_vm4, %v1711_v62, 0.0 }
 0xc5c   :  { %1109 = vmax.xlane.f32.xlu0 %v1108_v52 }
 0xc5e   :  { %v1009_v55 = vpop.f32.mrf.mxu2 }
 0xc5f   :  { %v1010_v56 = vadd.f32 %v1009_v55, %v1880_v43 }
 0xc60   :  { %v1105_v11 = vpop.f32.mrf.mxu3 }
 0xc61   :  { %v1106_v58 = vadd.f32 %v1105_v11, %v1880_v43  ;;  %v1015_v59 = vsel %vm143_vm4, %v1010_v56, -inf }
 0xc62   :  { %1016 = vmax.xlane.f32.xlu1 %v1015_v59  ;;  %v1197_v59 = vld [vmem:[#allocation2 + $0x178] sm:$0xff] }
 0xc63   :  { %v1111_v61 = vsel %vm143_vm4, %v1106_v58, -inf }
 0xc64   :  { %929 = vadd.xlane.f32.xlu0 %v928_v28  ;;  %1112 = vmax.xlane.f32.xlu2 %v1111_v61  ;;  %v1196_v28 = vld [vmem:[#allocation2 + $0x170] sm:$0xff]  ;;  %v1195_v61 = vld [vmem:[#allocation2 + $0x168] sm:$0xff] }
 0xc6c   :  { %932 = vadd.xlane.f32.xlu2 %v931_v63 }
 0xc7b   :  { %1623 = vrot.lane.b32.xlu1 %v1977_v53, %s1803_s26 }
 0xc83   :  { %1633 = vrot.lane.b32.xlu1 %v1977_v53, %s1804_s27 }
 0xccd   :  { %v1014_v43 = vpop.xlane.xlu2 %1013 }
 0xcce   :  { %v1018_v0 = vsub.f32 %v1007_v46, %v1014_v43 }
 0xccf   :  { %v1110_v1 = vpop.xlane.xlu0 %1109 }
 0xcd0   :  { %v1020_v2 = vmul.f32 1.442695, %v1018_v0  ;;  %v1114_v3 = vsub.f32 %v1103_v49, %v1110_v1 }
 0xcd2   :  { %1712 = vpow2.f32 %v1020_v2  ;;  %v1116_v4 = vmul.f32 1.442695, %v1114_v3 }
 0xcd4   :  { %1714 = vpow2.f32 %v1116_v4 }
 0xcd5   :  { %v1017_v5 = vpop.xlane.xlu1 %1016 }
 0xcd6   :  { %v1019_v6 = vsub.f32 %v1010_v56, %v1017_v5 }
 0xcd7   :  { %v1113_v7 = vpop.xlane.xlu2 %1112  ;;  %v930_v19 = vpop.xlane.xlu0 %929 }
 0xcd8   :  { %v1713_v8 = vpop.eup %1712  ;;  %v1022_v10 = vmul.f32 1.442695, %v1019_v6  ;;  %v1115_v13 = vsub.f32 %v1106_v58, %v1113_v7  ;;  %v1198_v58 = vld [vmem:[#allocation2 + $0x180] sm:$0xff] }
 0xcd9   :  { %v1024_v12 = vsel %vm143_vm4, %v1713_v8, 0.0  ;;  %1219 = vmatpush.msra.mxu2 %v1198_v58  ;;  %v1327_v58 = vld [vmem:[#allocation2 + $0x1f8] sm:$0xff] }
 0xcda   :  { %v1715_v17 = vpop.eup %1714  ;;  %1716 = vpow2.f32 %v1022_v10  ;;  %1025 = vadd.xlane.f32.xlu0 %v1024_v12  ;;  %v1118_v15 = vmul.f32 1.442695, %v1115_v13 }
 0xcdb   :  { %v1120_v14 = vsel %vm143_vm4, %v1715_v17, 0.0  ;;  %1220 = vmatpush.msra.mxu2 %v1197_v59 }
 0xcdc   :  { %1121 = vadd.xlane.f32.xlu2 %v1120_v14  ;;  %1718 = vpow2.f32 %v1118_v15 }
 0xcdd   :  { %1720 = vrcp.f32 %v930_v19  ;;  %1221 = vmatpush.msra.mxu2 %v1196_v28 }
 0xcdf   :  { %v933_v22 = vpop.xlane.xlu2 %932  ;;  %1222 = vmatpush.msra.mxu2 %v1195_v61 }
 0xce0   :  { %v1717_v16 = vpop.eup %1716  ;;  %1722 = vrcp.f32 %v933_v22 }
 0xce1   :  { %v1027_v18 = vsel %vm143_vm4, %v1717_v16, 0.0 }
 0xce2   :  { %v1719_v20 = vpop.eup %1718 }
 0xce3   :  { %v1123_v21 = vsel %vm143_vm4, %v1719_v20, 0.0  ;;  %v1721_v24 = vpop.eup %1720 }
 0xce4   :  { %1028 = vadd.xlane.f32.xlu2 %v1027_v18  ;;  %v936_v27 = vmul.f32 %v1721_v24, %v1709_v57 }
 0xce6   :  { %v1723_v30 = vpop.eup %1722 }
 0xce7   :  { %v937_v33 = vmul.f32 %v1723_v30, %v1711_v62  ;;  %v1284_v30 = vld [vmem:[#allocation2 + $0x1a0] sm:$0xff] }
 0xcec   :  { %1124 = vadd.xlane.f32.xlu2 %v1123_v21 }
 0xced   :  { %v1624_v23 = vpop.permute.xlu1 %1623 }
 0xcee   :  { %v1625_v25 = vunpack.i.l.bf16 %v1624_v23  ;;  %1628 = vrot.lane.b32.xlu0 %v1977_v53, %s1805_s28  ;;  %v1626_v26 = vunpack.i.h.bf16 %v1624_v23 }
 0xcf0   :  { %964 = vmatpush.msrb.mxu1 %v1625_v25 }
 0xcf2   :  { %965 = vmatpush.msrb.mxu1 %v1626_v26  ;;  %v1287_v26 = vld [vmem:[#allocation2 + $0x1b8] sm:$0xff] }
 0xcf3   :  { %1557 = vmatmul.msk.f32.vlgmr.msrb.gmra.mxu1 %vm143_vm4, %v936_v27  ;;  %v1286_v27 = vld [vmem:[#allocation2 + $0x1b0] sm:$0xff] }
 0xcf5   :  { %v1634_v29 = vpop.permute.xlu1 %1633 }
 0xcf6   :  { %v1635_v31 = vunpack.i.l.bf16 %v1634_v29  ;;  %v1636_v32 = vunpack.i.h.bf16 %v1634_v29  ;;  %v1285_v29 = vld [vmem:[#allocation2 + $0x1a8] sm:$0xff] }
 0xcf8   :  { %1156 = vmatpush.msra.mxu1 %v1635_v31 }
 0xcfa   :  { %1157 = vmatpush.msra.mxu1 %v1636_v32 }
 0xcfb   :  { %1558 = vmatmul.msk.f32.gmra.mxu1 %vm143_vm4, %v937_v33 }
 0xd4d   :  { %v1026_v37 = vpop.xlane.xlu0 %1025 }
 0xd4f   :  { %v1122_v34 = vpop.xlane.xlu2 %1121 }
 0xd50   :  { %1724 = vrcp.f32 %v1122_v34  ;;  %v1336_v34 = vld [vmem:[#allocation2 + $0x240] sm:$0xff] }
 0xd51   :  { %1726 = vrcp.f32 %v1026_v37  ;;  %1339 = vmatpush.msrb.mxu3 %v1336_v34 }
 0xd56   :  { %v1725_v35 = vpop.eup %1724 }
 0xd57   :  { %v1128_v53 = vmul.f32 %v1725_v35, %v1715_v17  ;;  %v1029_v36 = vpop.xlane.xlu2 %1028  ;;  %v1727_v42 = vpop.eup %1726  ;;  %v1335_v35 = vld [vmem:[#allocation2 + $0x238] sm:$0xff] }
 0xd58   :  { %v1032_v46 = vmul.f32 %v1727_v42, %v1713_v8  ;;  %1340 = vmatpush.msrb.mxu3 %v1335_v35 }
 0xd59   :  { %1569 = vmatmul.msk.f32.vlgmr.msra.gmra.mxu1 %vm143_vm4, %v1128_v53  ;;  %v1334_v53 = vld [vmem:[#allocation2 + $0x230] sm:$0xff] }
 0xd5a   :  { %1341 = vmatpush.msrb.mxu3 %v1334_v53 }
 0xd5f   :  { %v1125_v39 = vpop.xlane.xlu2 %1124 }
 0xd60   :  { %1728 = vrcp.f32 %v1125_v39  ;;  %v1629_v40 = vpop.permute.xlu0 %1628  ;;  %v1333_v39 = vld [vmem:[#allocation2 + $0x228] sm:$0xff] }
 0xd61   :  { %v1630_v44 = vunpack.i.l.bf16 %v1629_v40  ;;  %1730 = vrcp.f32 %v1029_v36  ;;  %v1631_v45 = vunpack.i.h.bf16 %v1629_v40  ;;  %1342 = vmatpush.msrb.mxu3 %v1333_v39 }
 0xd63   :  { %1060 = vmatpush.msra.mxu0 %v1630_v44  ;;  %v1332_v44 = vld [vmem:[#allocation2 + $0x220] sm:$0xff] }
 0xd64   :  { %1343 = vmatpush.msrb.mxu3 %v1332_v44 }
 0xd65   :  { %1061 = vmatpush.msra.mxu0 %v1631_v45 }
 0xd66   :  { %v1729_v48 = vpop.eup %1728  ;;  %1563 = vmatmul.msk.f32.vlgmr.msra.gmra.mxu0 %vm143_vm4, %v1032_v46  ;;  %v1331_v46 = vld [vmem:[#allocation2 + $0x218] sm:$0xff] }
 0xd67   :  { %v1129_v49 = vmul.f32 %v1729_v48, %v1719_v20  ;;  %v1731_v50 = vpop.eup %1730  ;;  %1308 = vmatpush.msrb.mxu0 %v1287_v26  ;;  %1344 = vmatpush.msrb.mxu3 %v1331_v46  ;;  %v1424_v46 = vld [vmem:[#allocation2 + $0x260] sm:$0xff] }
 0xd68   :  { %v1033_v51 = vmul.f32 %v1731_v50, %v1717_v16 }
 0xd69   :  { %1570 = vmatmul.msk.f32.gmra.mxu1 %vm143_vm4, %v1129_v49  ;;  %1309 = vmatpush.msrb.mxu0 %v1286_v27  ;;  %v1330_v49 = vld [vmem:[#allocation2 + $0x210] sm:$0xff] }
 0xd6a   :  { %1345 = vmatpush.msrb.mxu3 %v1330_v49  ;;  %v1461_v49 = vld [vmem:[#allocation2 + $0x2c0] sm:$0xff] }
 0xd6b   :  { %1310 = vmatpush.msrb.mxu0 %v1285_v29  ;;  %1476 = vmatpush.msrb.mxu2 %v1461_v49 }
 0xd6d   :  { %1311 = vmatpush.msrb.mxu0 %v1284_v30 }
 0xd6e   :  { %1564 = vmatmul.msk.f32.gmra.mxu0 %vm143_vm4, %v1033_v51  ;;  %v1329_v51 = vld [vmem:[#allocation2 + $0x208] sm:$0xff] }
 0xd6f   :  { %1346 = vmatpush.msrb.mxu3 %v1329_v51 }
 0xd70   :  { %v967_v52 = vpop.f32.mrf.mxu1 }
 0xd71   :  { %1167 = vrot.lane.b32.xlu0 %v967_v52, %s1794_s15 }
 0xd78   :  { %v970_v9 = vpop.f32.mrf.mxu1 }
 0xd79   :  { %1169 = vrot.lane.b32.xlu0 %v970_v9, %s1794_s15 }
 0xdd6   :  { %v1159_v55 = vpop.f32.mrf.mxu1 }
 0xdd7   :  { %1183 = vrot.lane.b32.xlu2 %v1159_v55, %s1806_s29  ;;  %v1328_v55 = vld [vmem:[#allocation2 + $0x200] sm:$0xff] }
 0xdd8   :  { %1347 = vmatpush.msrb.mxu3 %v1328_v55 }
 0xdda   :  { %1348 = vmatpush.msrb.mxu3 %v1327_v58  ;;  %v1457_v58 = vld [vmem:[#allocation2 + $0x2a0] sm:$0xff] }
 0xde3   :  { %v1063_v56 = vpop.f32.mrf.mxu0  ;;  %v1168_v62 = vpop.permute.xlu0 %1167 }
 0xde4   :  { %1175 = vrot.lane.b32.xlu1 %v1063_v56, %s1807_s30  ;;  %v1189_v63 = vsel %vm111_vm3, %v2028_v38, %v1168_v62  ;;  %v1647_v38 = vld [vmem:[#allocation2 + $0x188] ss:$0 sm:$0xff]  ;;  %v1649_v62 = vld [vmem:[#allocation2 + $0x198] ss:$0 sm:$0xff] }
 0xde6   :  { %v1162_v57 = vpop.f32.mrf.mxu1 }
 0xde7   :  { %1185 = vrot.lane.b32.xlu0 %v1162_v57, %s1806_s29 }
 0xdeb   :  { %v1066_v11 = vpop.f32.mrf.mxu0  ;;  %v1170_v0 = vpop.permute.xlu0 %1169 }
 0xdec   :  { %1177 = vrot.lane.b32.xlu1 %v1066_v11, %s1807_s30  ;;  %v1190_v4 = vsel %vm111_vm3, %v2030_v60, %v1170_v0  ;;  %v1648_v11 = vld [vmem:[#allocation2 + $0x190] ss:$0 sm:$0xff] }
 0xe31   :  { %v1184_v1 = vpop.permute.xlu2 %1183 }
 0xe56   :  { %v1176_v43 = vpop.permute.xlu1 %1175 }
 0xe57   :  { %v1191_v2 = vsel %vm143_vm4, %v1189_v63, %v1176_v43  ;;  %v1326_v63 = vld [vmem:[#allocation2 + $0x1f0] sm:$0xff] }
 0xe58   :  { %v1193_v3 = vsel %vm517_vm5, %v1191_v2, %v1184_v1  ;;  %v1325_v1 = vld [vmem:[#allocation2 + $0x1e8] sm:$0xff]  ;;  %1349 = vmatpush.msrb.mxu3 %v1326_v63 }
 0xe59   :  { %1571 = vmatmul.msk.f32.vlgmr.msra.gmra.mxu2 %vm75_vm2, %v1193_v3  ;;  %v1186_v6 = vpop.permute.xlu0 %1185 }
 0xe5a   :  { %1350 = vmatpush.msrb.mxu3 %v1325_v1  ;;  %v1652_v1 = vld [vmem:[#allocation2 + $0x250] ss:$0 sm:$0xff] }
 0xe5e   :  { %v1178_v5 = vpop.permute.xlu1 %1177 }
 0xe5f   :  { %v1192_v7 = vsel %vm143_vm4, %v1190_v4, %v1178_v5  ;;  %v1324_v4 = vld [vmem:[#allocation2 + $0x1e0] sm:$0xff] }
 0xe60   :  { %v1194_v8 = vsel %vm517_vm5, %v1192_v7, %v1186_v6  ;;  %1351 = vmatpush.msrb.mxu3 %v1324_v4 }
 0xe61   :  { %1572 = vmatmul.msk.f32.gmra.mxu2 %vm75_vm2, %v1194_v8 }
 0xedc   :  { %v1224_v10 = vpop.f32.mrf.mxu2 }
 0xedd   :  { %v1225_v12 = vadd.f32 %v1647_v38, %v1224_v10  ;;  %v1323_v10 = vld [vmem:[#allocation2 + $0x1d8] sm:$0xff] }
 0xede   :  { %1352 = vmatpush.msrb.mxu3 %v1323_v10 }
 0xedf   :  { %v1230_v17 = vadd.f32 %v1225_v12, %v1963_v41  ;;  %v1322_v12 = vld [vmem:[#allocation2 + $0x1d0] sm:$0xff] }
 0xee0   :  { %1353 = vmatpush.msrb.mxu3 %v1322_v12 }
 0xee1   :  { %v1234_v13 = vsel %vm75_vm2, %v1230_v17, 0.0 }
 0xee2   :  { %1235 = vadd.xlane.f32.xlu1 %v1234_v13  ;;  %v1650_v13 = vld [vmem:[#allocation2 + $0x1c0] ss:$0 sm:$0xff] }
 0xee4   :  { %v1227_v14 = vpop.f32.mrf.mxu2 }
 0xee5   :  { %v1228_v15 = vadd.f32 %v1647_v38, %v1227_v14 }
 0xee7   :  { %v1231_v60 = vadd.f32 %v1228_v15, %v1967_v47 }
 0xee9   :  { %v1237_v16 = vsel %vm75_vm2, %v1231_v60, 0.0 }
 0xeea   :  { %1238 = vadd.xlane.f32.xlu0 %v1237_v16 }
 0xf55   :  { %v1236_v18 = vpop.xlane.xlu1 %1235 }
 0xf56   :  { %v1240_v19 = vmul.f32 %v1236_v18, %v1940_v54 }
 0xf58   :  { %v1242_v20 = vsub.f32 %v1230_v17, %v1240_v19  ;;  %v1321_v17 = vld [vmem:[#allocation2 + $0x1c8] sm:$0xff] }
 0xf59   :  { %1354 = vmatpush.msrb.mxu3 %v1321_v17 }
 0xf5a   :  { %v1244_v21 = vmul.f32 %v1242_v20, %v1242_v20 }
 0xf5c   :  { %v1246_v22 = vsel %vm75_vm2, %v1244_v21, 0.0 }
 0xf5d   :  { %v1239_v23 = vpop.xlane.xlu0 %1238  ;;  %1247 = vadd.xlane.f32.xlu2 %v1246_v22 }
 0xf5e   :  { %v1241_v41 = vmul.f32 %v1239_v23, %v1940_v54 }
 0xf60   :  { %v2081_v24 = vsub.f32 %v1231_v60, %v1241_v41 }
 0xf62   :  { %v1245_v25 = vmul.f32 %v2081_v24, %v2081_v24 }
 0xf64   :  { %v1249_v47 = vsel %vm75_vm2, %v1245_v25, 0.0 }
 0xf65   :  { %1250 = vadd.xlane.f32.xlu1 %v1249_v47 }
 0xfd0   :  { %v1248_v31 = vpop.xlane.xlu2 %1247 }
 0xfd1   :  { %v1252_v32 = vmul.f32 %v1248_v31, %v1940_v54 }
 0xfd3   :  { %v1254_v33 = vadd.f32 1e-05, %v1252_v32 }
 0xfd5   :  { %1732 = vrsqrt.f32 %v1254_v33  ;;  %vm1262_vm4 = vweird.f32 %v1254_v33 }
 0xfd8   :  { %v1251_v36 = vpop.xlane.xlu1 %1250 }
 0xfd9   :  { %v1253_v37 = vmul.f32 %v1251_v36, %v1940_v54 }
 0xfdb   :  { %v1733_v40 = vpop.eup %1732  ;;  %v1255_v42 = vadd.f32 1e-05, %v1253_v37 }
 0xfdc   :  { %v1257_v45 = vmul.f32 %v1733_v40, %v1254_v33  ;;  %vm1263_vm3 = vweird.f32 %v1733_v40 }
 0xfdd   :  { %1734 = vrsqrt.f32 %v1255_v42  ;;  %vm1264_vm5 = vmor %vm1262_vm4, %vm1263_vm3  ;;  %vm1272_vm8 = vweird.f32 %v1255_v42 }
 0xfde   :  { %v1258_v48 = vmul.f32 %v1733_v40, %v1257_v45  ;;  %v1425_v45 = vld [vmem:[#allocation2 + $0x268] sm:$0xff] }
 0xfe0   :  { %v1259_v50 = vmul.f32 0.5, %v1258_v48 }
 0xfe2   :  { %v1260_v52 = vsub.f32 1.5, %v1259_v50  ;;  %v1460_v50 = vld [vmem:[#allocation2 + $0x2b8] sm:$0xff] }
 0xfe3   :  { %v1735_v9 = vpop.eup %1734  ;;  %1477 = vmatpush.msrb.mxu2 %v1460_v50 }
 0xfe4   :  { %v1261_v56 = vmul.f32 %v1733_v40, %v1260_v52  ;;  %v1267_v57 = vmul.f32 %v1735_v9, %v1255_v42  ;;  %vm1273_vm7 = vweird.f32 %v1735_v9  ;;  %v1426_v42 = vld [vmem:[#allocation2 + $0x270] sm:$0xff] }
 0xfe5   :  { %vm1274_vm9 = vmor %vm1272_vm8, %vm1273_vm7  ;;  %v1459_v52 = vld [vmem:[#allocation2 + $0x2b0] sm:$0xff] }
 0xfe6   :  { %v1265_v59 = vsel %vm1264_vm5, %v1733_v40, %v1261_v56  ;;  %v1268_v28 = vmul.f32 %v1735_v9, %v1267_v57  ;;  %v1427_v40 = vld [vmem:[#allocation2 + $0x278] sm:$0xff]  ;;  %v1458_v57 = vld [vmem:[#allocation2 + $0x2a8] sm:$0xff]  ;;  %1478 = vmatpush.msrb.mxu2 %v1459_v52 }
 0xfe7   :  { %v1276_v61 = vmul.f32 %v1265_v59, %v1242_v20  ;;  %v1651_v20 = vld [vmem:[#allocation2 + $0x248] ss:$0 sm:$0xff]  ;;  %1445 = vmatpush.msrb.mxu1 %v1427_v40 }
 0xfe8   :  { %v1269_v43 = vmul.f32 0.5, %v1268_v28  ;;  %1479 = vmatpush.msrb.mxu2 %v1458_v57 }
 0xfe9   :  { %v1279_v0 = vmul.f32 %v1648_v11, %v1276_v61  ;;  %1446 = vmatpush.msrb.mxu1 %v1426_v42 }
 0xfea   :  { %v1270_v2 = vsub.f32 1.5, %v1269_v43  ;;  %1480 = vmatpush.msrb.mxu2 %v1457_v58 }
 0xfeb   :  { %v1282_v3 = vadd.f32 %v1649_v62, %v1279_v0  ;;  %1447 = vmatpush.msrb.mxu1 %v1425_v45 }
 0xfec   :  { %v1271_v5 = vmul.f32 %v1735_v9, %v1270_v2 }
 0xfed   :  { %1573 = vmatmul.msk.f32.vlgmr.msrb.gmra.mxu0 %vm75_vm2, %v1282_v3  ;;  %1448 = vmatpush.msrb.mxu1 %v1424_v46 }
 0xfee   :  { %v1275_v6 = vsel %vm1274_vm9, %v1735_v9, %v1271_v5 }
 0xfef   :  { %v1277_v7 = vmul.f32 %v1275_v6, %v2081_v24  ;;  %v1653_v6 = vld [vmem:[#allocation2 + $0x258] ss:$0 sm:$0xff] }
 0xff1   :  { %v1280_v8 = vmul.f32 %v1648_v11, %v1277_v7 }
 0xff3   :  { %v1283_v38 = vadd.f32 %v1649_v62, %v1280_v8 }
 0xff5   :  { %1574 = vmatmul.msk.f32.gmra.mxu0 %vm75_vm2, %v1283_v38 }
0x106a   :  { %v1313_v14 = vpop.f32.mrf.mxu0 }
0x106b   :  { %v1314_v15 = vadd.f32 %v1650_v13, %v1313_v14 }
0x106d   :  { %v1319_v60 = vmax.f32 %v1314_v15, 0.0  ;;  %v1456_v15 = vld [vmem:[#allocation2 + $0x298] sm:$0xff] }
0x106e   :  { %1481 = vmatpush.msrb.mxu2 %v1456_v15 }
0x106f   :  { %1355 = vmatmul.f32.vlgmr.msrb.gmra.mxu3 %v1319_v60  ;;  %v1455_v60 = vld [vmem:[#allocation2 + $0x290] sm:$0xff] }
0x1070   :  { %1482 = vmatpush.msrb.mxu2 %v1455_v60 }
0x1072   :  { %v1316_v16 = vpop.f32.mrf.mxu0 }
0x1073   :  { %v1317_v18 = vadd.f32 %v1650_v13, %v1316_v16  ;;  %v1454_v16 = vld [vmem:[#allocation2 + $0x288] sm:$0xff] }
0x1074   :  { %1483 = vmatpush.msrb.mxu2 %v1454_v16 }
0x1075   :  { %v1320_v19 = vmax.f32 %v1317_v18, 0.0  ;;  %v1654_v18 = vld [vmem:[#allocation2 + $0x280] ss:$0 sm:$0xff] }
0x1077   :  { %1358 = vmatmul.f32.gmra.mxu3 %v1320_v19 }
0x10f2   :  { %v1356_v21 = vpop.f32.mrf.mxu3 }
0x10f3   :  { %v1357_v22 = vadd.f32 %v1651_v20, %v1356_v21 }
0x10f5   :  { %v1362_v23 = vadd.f32 %v1357_v22, %v1282_v3  ;;  %v1655_v22 = vld [vmem:[#allocation2 + $0x2c8] ss:$0 sm:$0xff] }
0x10f7   :  { %v1366_v41 = vsel %vm75_vm2, %v1362_v23, 0.0 }
0x10f8   :  { %1367 = vadd.xlane.f32.xlu0 %v1366_v41 }
0x10fa   :  { %v1359_v24 = vpop.f32.mrf.mxu3 }
0x10fb   :  { %v1360_v25 = vadd.f32 %v1651_v20, %v1359_v24 }
0x10fd   :  { %v1363_v47 = vadd.f32 %v1360_v25, %v1283_v38  ;;  %v1657_v25 = vld [vmem:[#allocation2 + $0x2d8] ss:$0 sm:$0xff] }
0x10ff   :  { %v1369_v26 = vsel %vm75_vm2, %v1363_v47, 0.0 }
0x1100   :  { %1370 = vadd.xlane.f32.xlu1 %v1369_v26 }
0x116b   :  { %v1368_v27 = vpop.xlane.xlu0 %1367 }
0x116c   :  { %v1372_v29 = vmul.f32 %v1368_v27, %v1940_v54 }
0x116e   :  { %v1374_v30 = vsub.f32 %v1362_v23, %v1372_v29  ;;  %v1656_v23 = vld [vmem:[#allocation2 + $0x2d0] ss:$0 sm:$0xff] }
0x1170   :  { %v1376_v31 = vmul.f32 %v1374_v30, %v1374_v30 }
0x1172   :  { %v1378_v32 = vsel %vm75_vm2, %v1376_v31, 0.0 }
0x1173   :  { %1379 = vadd.xlane.f32.xlu2 %v1378_v32  ;;  %v1371_v33 = vpop.xlane.xlu1 %1370 }
0x1174   :  { %v1373_v34 = vmul.f32 %v1371_v33, %v1940_v54 }
0x1176   :  { %v1375_v35 = vsub.f32 %v1363_v47, %v1373_v34 }
0x1178   :  { %v1377_v53 = vmul.f32 %v1375_v35, %v1375_v35 }
0x117a   :  { %v1381_v36 = vsel %vm75_vm2, %v1377_v53, 0.0 }
0x117b   :  { %1382 = vadd.xlane.f32.xlu0 %v1381_v36 }
0x11e6   :  { %v1380_v37 = vpop.xlane.xlu2 %1379 }
0x11e7   :  { %v1384_v39 = vmul.f32 %v1380_v37, %v1940_v54 }
0x11e9   :  { %v1386_v44 = vadd.f32 1e-05, %v1384_v39 }
0x11eb   :  { %1736 = vrsqrt.f32 %v1386_v44  ;;  %vm1394_vm11 = vweird.f32 %v1386_v44 }
0x11ee   :  { %v1383_v48 = vpop.xlane.xlu0 %1382 }
0x11ef   :  { %v1385_v51 = vmul.f32 %v1383_v48, %v1940_v54 }
0x11f1   :  { %v1737_v9 = vpop.eup %1736  ;;  %v1387_v55 = vadd.f32 1e-05, %v1385_v51 }
0x11f2   :  { %v1389_v56 = vmul.f32 %v1737_v9, %v1386_v44  ;;  %vm1395_vm10 = vweird.f32 %v1737_v9 }
0x11f3   :  { %1738 = vrsqrt.f32 %v1387_v55  ;;  %vm1396_vm12 = vmor %vm1394_vm11, %vm1395_vm10  ;;  %vm1404_vm14 = vweird.f32 %v1387_v55 }
0x11f4   :  { %v1390_v11 = vmul.f32 %v1737_v9, %v1389_v56 }
0x11f6   :  { %v1391_v59 = vmul.f32 0.5, %v1390_v11 }
0x11f8   :  { %v1392_v28 = vsub.f32 1.5, %v1391_v59 }
0x11f9   :  { %v1739_v61 = vpop.eup %1738 }
0x11fa   :  { %v1393_v62 = vmul.f32 %v1737_v9, %v1392_v28  ;;  %v1399_v54 = vmul.f32 %v1739_v61, %v1387_v55  ;;  %vm1405_vm13 = vweird.f32 %v1739_v61 }
0x11fb   :  { %vm1406_vm15 = vmor %vm1404_vm14, %vm1405_vm13 }
0x11fc   :  { %v1397_v63 = vsel %vm1396_vm12, %v1737_v9, %v1393_v62  ;;  %v1400_v43 = vmul.f32 %v1739_v61, %v1399_v54 }
0x11fd   :  { %v1408_v2 = vmul.f32 %v1397_v63, %v1374_v30 }
0x11fe   :  { %v1401_v0 = vmul.f32 0.5, %v1400_v43 }
0x11ff   :  { %v1411_v5 = vmul.f32 %v1652_v1, %v1408_v2 }
0x1200   :  { %v1402_v3 = vsub.f32 1.5, %v1401_v0 }
0x1201   :  { %v1414_v10 = vadd.f32 %v1653_v6, %v1411_v5 }
0x1202   :  { %v1403_v4 = vmul.f32 %v1739_v61, %v1402_v3 }
0x1203   :  { %v1417_v17 = vrot.slane %v1414_v10, 7 }
0x1204   :  { %v1407_v7 = vsel %vm1406_vm15, %v1739_v61, %v1403_v4 }
0x1205   :  { %v1409_v8 = vmul.f32 %v1407_v7, %v1375_v35 }
0x1207   :  { %v1412_v38 = vmul.f32 %v1652_v1, %v1409_v8 }
0x1209   :  { %v1415_v12 = vadd.f32 %v1653_v6, %v1412_v38 }
0x120b   :  { %v1420_v13 = vrot.slane %v1415_v12, 6 }
0x120d   :  { %v1423_v14 = vsel %vm1422_vm0, %v1417_v17, %v1420_v13 }
0x120e   :  { %1575 = vmatmul.msk.f32.vlgmr.msrb.gmra.mxu1 %vm75_vm2, %v1423_v14 }
0x128b   :  { %v1450_v19 = vpop.f32.mrf.mxu1 }
0x128c   :  { %v1451_v20 = vadd.f32 %v1654_v18, %v1450_v19 }
0x128e   :  { %v1453_v21 = vmax.f32 %v1451_v20, 0.0 }
0x1290   :  { %1576 = vmatmul.msk.f32.vlgmr.msrb.gmra.mxu2 %vm1464_vm1, %v1453_v21 }
0x1313   :  { %v1485_v41 = vpop.f32.mrf.mxu2 }
0x1314   :  { %v1486_v24 = vadd.f32 %v1655_v22, %v1485_v41 }
0x1316   :  { %v1490_v47 = vmul.f32 %v1656_v23, %v1486_v24 }
0x1318   :  { %v1493_v26 = vadd.f32 %v1657_v25, %v1490_v47 }
0x131a   :  { %1494 = vst [vmem:[#allocation5] sm:$0x3] %v1493_v26 }
0x131b   :  { %1505 = dma.vmem_to_hbm [thread:$0]  %s1501_s4, 32, %s1503_s7, [#allocation4]  }
0x131c   :  { %1790 = dma.done.wait [#allocation4], 32  }
0x131d   :  { %1791 = vsyncadd [#allocation4], 4294967264 }
0x131e   :  { %1510 = vsyncpa [#allocation3], 1 }
0x131f   :  { %1511 = vsyncpa [#allocation4], 1 }

</bundles_post_ra>
